<compile_context>
chip_gen: v7x
topology: tpu7x:2x2x1
jax: 0.10.0
libtpu: 0.0.40
codegen_flags: <defaults>
</compile_context>

<pallas_src>
import functools

import jax
import jax.numpy as jnp
from jax.experimental import pallas as pl
from jax.experimental.pallas import tpu as pltpu

EPS = 1e-5                     # torch BatchNorm1d default
LANE = 128                     # TPU lane width (last dim)
SUBLANE = 8                    # TPU sublane width (second-to-last dim)
COMPUTE_DTYPE = jnp.bfloat16   # MXU operand dtype (accumulation stays f32)


def _round_up(x, m):
    return (x + m - 1) // m * m


def _pick_row_tile(n_rows, max_feat, tm_req, vmem_budget=24 << 20):
    """Largest row tile <= tm_req that fits the VMEM budget (v7x-safe)."""
    tm = max(SUBLANE, min(_round_up(n_rows, SUBLANE), _round_up(tm_req, SUBLANE)))

    def vmem_bytes(t):
        # 2x-buffered f32 input row tile + 2x-buffered f32 output row tile
        # + resident bf16 weight panel (worst case across the three layers).
        return 2 * (t * max_feat * 4) * 2 + 2 * (max_feat * max_feat * 2)

    while tm > SUBLANE and vmem_bytes(tm) > vmem_budget:
        tm = _round_up(tm // 2, SUBLANE)
    return tm


# -----------------------------------------------------------------------------
# Kernels
# -----------------------------------------------------------------------------
def _matmul_stats_kernel(x_ref, w_ref, h_ref, stats_ref):
    """h = x @ w (bias dropped: cancelled by the following train-mode BN).
    Accumulates per-channel [sum; sum_sq] into a grid-resident output block."""
    h = jnp.dot(x_ref[...].astype(COMPUTE_DTYPE), w_ref[...],
                preferred_element_type=jnp.float32)
    h_ref[...] = h

    @pl.when(pl.program_id(0) == 0)
    def _():
        stats_ref[...] = jnp.zeros_like(stats_ref)

    sum_row = jnp.sum(h, axis=0, keepdims=True)
    sq_row = jnp.sum(h * h, axis=0, keepdims=True)
    stats_ref[...] += jnp.concatenate([sum_row, sq_row], axis=0)


def _bn_relu_matmul_stats_kernel(h_ref, scale_ref, shift_ref, w_ref,
                                 o_ref, stats_ref, *, tm, n_valid_rows):
    """o = relu(h*scale + shift) @ w ; accumulate per-channel stats of o.
    Rows beyond n_valid_rows (row padding) are zeroed so they cannot bias the
    next layer's batch statistics."""
    a = h_ref[...] * scale_ref[...] + shift_ref[...]
    a = jnp.maximum(a, 0.0)
    if n_valid_rows % tm != 0:        # static: only emit the mask if padded
        row = (pl.program_id(0) * tm
               + jax.lax.broadcasted_iota(jnp.int32, (a.shape[0], 1), 0))
        a = jnp.where(row < n_valid_rows, a, 0.0)
    o = jnp.dot(a.astype(COMPUTE_DTYPE), w_ref[...],
                preferred_element_type=jnp.float32)
    o_ref[...] = o

    @pl.when(pl.program_id(0) == 0)
    def _():
        stats_ref[...] = jnp.zeros_like(stats_ref)

    sum_row = jnp.sum(o, axis=0, keepdims=True)
    sq_row = jnp.sum(o * o, axis=0, keepdims=True)
    stats_ref[...] += jnp.concatenate([sum_row, sq_row], axis=0)


def _bn_relu_matmul_bias_kernel(h_ref, scale_ref, shift_ref, w_ref, b_ref, o_ref):
    """o = relu(h*scale + shift) @ w + b  (output projection keeps its bias)."""
    a = jnp.maximum(h_ref[...] * scale_ref[...] + shift_ref[...], 0.0)
    o_ref[...] = (jnp.dot(a.astype(COMPUTE_DTYPE), w_ref[...],
                          preferred_element_type=jnp.float32) + b_ref[...])


# -----------------------------------------------------------------------------
# Wrapper
# -----------------------------------------------------------------------------
def _bn_scale_shift(stats, gamma, beta, n_rows):
    """Fold train-mode BatchNorm into per-channel scale/shift (one-pass var)."""
    mean = stats[0:1, :] / n_rows
    var = jnp.maximum(stats[1:2, :] / n_rows - mean * mean, 0.0)
    scale = gamma * jax.lax.rsqrt(var + EPS)
    shift = beta - mean * scale
    return scale, shift


@functools.partial(jax.jit, static_argnames=("tm",))
def mlp_forward(x, params, *, tm=512):
    """x: (B, S, F_in) float32. params: see init_params."""
    (w1, b1, g1, be1), (w2, b2, g2, be2), (w3, b3) = params
    del b1, b2  # cancelled exactly by the train-mode BatchNorm that follows
    B, S, F = x.shape
    H1, H2, OUT = w1.shape[1], w2.shape[1], w3.shape[1]
    N = B * S

    # ---- lane-dense padding of feature dims to multiples of 128 --------------
    Fp, H1p, H2p, OUTp = (_round_up(d, LANE) for d in (F, H1, H2, OUT))

    def pad2(w, r, c):
        return jnp.pad(w, ((0, r - w.shape[0]), (0, c - w.shape[1])))

    def pad_row(v, c):
        return jnp.pad(v.reshape(1, -1), ((0, 0), (0, c - v.shape[0])))

    w1p = pad2(w1, Fp, H1p).astype(COMPUTE_DTYPE)
    w2p = pad2(w2, H1p, H2p).astype(COMPUTE_DTYPE)
    w3p = pad2(w3, H2p, OUTp).astype(COMPUTE_DTYPE)
    g1p, be1p = pad_row(g1, H1p), pad_row(be1, H1p)
    g2p, be2p = pad_row(g2, H2p), pad_row(be2, H2p)
    b3p = pad_row(b3, OUTp)

    # ---- row tiling -----------------------------------------------------------
    tm = _pick_row_tile(N, max(Fp, H1p, H2p, OUTp), tm)
    Np = _round_up(N, tm)
    # Feed layer-1 input as bf16: matmul operands are bf16 anyway, halves DMA.
    x2d = jnp.pad(x.reshape(N, F), ((0, Np - N), (0, Fp - F))).astype(COMPUTE_DTYPE)
    grid = (Np // tm,)

    f32 = jnp.float32
    row_spec = lambda width: pl.BlockSpec((tm, width), lambda i: (i, 0))
    const_spec = lambda shape: pl.BlockSpec(shape, lambda i: (0, 0))
    acc_params = pltpu.CompilerParams(dimension_semantics=("arbitrary",))
    par_params = pltpu.CompilerParams(dimension_semantics=("parallel",))

    # ---- layer 1: x @ W1, accumulate per-channel stats ------------------------
    h1, stats1 = pl.pallas_call(
        _matmul_stats_kernel,
        grid=grid,
        in_specs=[row_spec(Fp), const_spec((Fp, H1p))],
        out_specs=(row_spec(H1p), const_spec((2, H1p))),
        out_shape=(jax.ShapeDtypeStruct((Np, H1p), f32),
                   jax.ShapeDtypeStruct((2, H1p), f32)),
        compiler_params=acc_params,
    )(x2d, w1p)
    scale1, shift1 = _bn_scale_shift(stats1, g1p, be1p, N)

    # ---- layer 2: BN+ReLU(h1) @ W2, accumulate per-channel stats --------------
    kernel2 = functools.partial(_bn_relu_matmul_stats_kernel,
                                tm=tm, n_valid_rows=N)
    h2, stats2 = pl.pallas_call(
        kernel2,
        grid=grid,
        in_specs=[row_spec(H1p), const_spec((1, H1p)), const_spec((1, H1p)),
                  const_spec((H1p, H2p))],
        out_specs=(row_spec(H2p), const_spec((2, H2p))),
        out_shape=(jax.ShapeDtypeStruct((Np, H2p), f32),
                   jax.ShapeDtypeStruct((2, H2p), f32)),
        compiler_params=acc_params,
    )(h1, scale1, shift1, w2p)
    scale2, shift2 = _bn_scale_shift(stats2, g2p, be2p, N)

    # ---- output: BN+ReLU(h2) @ W3 + b3 ----------------------------------------
    out = pl.pallas_call(
        _bn_relu_matmul_bias_kernel,
        grid=grid,
        in_specs=[row_spec(H2p), const_spec((1, H2p)), const_spec((1, H2p)),
                  const_spec((H2p, OUTp)), const_spec((1, OUTp))],
        out_specs=row_spec(OUTp),
        out_shape=jax.ShapeDtypeStruct((Np, OUTp), f32),
        compiler_params=par_params,
    )(h2, scale2, shift2, w3p, b3p)

    return out[:N, :OUT].reshape(B, S, OUT)


# -----------------------------------------------------------------------------
# Parameters & pure-JAX reference
# -----------------------------------------------------------------------------
def init_params(key, in_dim, layer_dimensions):
    """Deterministic synthetic parameters. Linear weights stored as (in, out)."""
    dims = [in_dim] + list(layer_dimensions)
    params = []
    for li in range(len(layer_dimensions) - 1):
        k1, k2, k3, k4, key = jax.random.split(key, 5)
        d_in, d_out = dims[li], dims[li + 1]
        w = jax.random.normal(k1, (d_in, d_out), jnp.float32) * 0.1
        b = jax.random.normal(k2, (d_out,), jnp.float32) * 0.1
        gamma = 1.0 + jax.random.normal(k3, (d_out,), jnp.float32) * 0.05
        beta = jax.random.normal(k4, (d_out,), jnp.float32) * 0.05
        params.append((w, b, gamma, beta))
    k1, k2, _ = jax.random.split(key, 3)
    w = jax.random.normal(k1, (dims[-2], dims[-1]), jnp.float32) * 0.1
    b = jax.random.normal(k2, (dims[-1],), jnp.float32) * 0.1
    params.append((w, b))
    return params


def mlp_reference(x, params):
    """Pure-JAX reference mirroring the PyTorch forward (train-mode BN,
    no dropout), with bf16 matmul operands to match the kernel's MXU dtype."""
    (w1, b1, g1, be1), (w2, b2, g2, be2), (w3, b3) = params
    B, S, F = x.shape
    h = x.reshape(B * S, F)

    def dot(a, w):
        return jnp.dot(a.astype(COMPUTE_DTYPE), w.astype(COMPUTE_DTYPE),
                       preferred_element_type=jnp.float32)

    def bn(h, g, be):
        m = h.mean(axis=0, keepdims=True)
        v = ((h - m) ** 2).mean(axis=0, keepdims=True)   # biased (train mode)
        return (h - m) / jnp.sqrt(v + EPS) * g + be

    h = jnp.maximum(bn(dot(h, w1) + b1, g1, be1), 0.0)
    h = jnp.maximum(bn(dot(h, w2) + b2, g2, be2), 0.0)
    h = dot(h, w3) + b3
    return h.reshape(B, S, -1)


if __name__ == "__main__":
    key = jax.random.PRNGKey(0)
    kx, kp = jax.random.split(key)

    # x is (batch, seq, out_size) as the PyTorch module expects.
    B, S = 4, 256                  # B*S = 1024 rows -> two 512-row tiles
    out_size = 16
    layer_dimensions = [32, 32, 8]
    dropout = 0.0                  # -> no Dropout layers appended

    x = jax.random.normal(kx, (B, S, out_size), jnp.float32)
    params = init_params(kp, out_size, layer_dimensions)

    y = jax.block_until_ready(mlp_forward(x, params))
    y_ref = mlp_reference(x, params)
    assert y.shape == (B, S, layer_dimensions[-1])
    assert jnp.allclose(y, y_ref, atol=1e-2, rtol=1e-2), \
        float(jnp.max(jnp.abs(y - y_ref)))

    # Ragged row count (B*S not a multiple of the row tile): exercises the
    # padded-row masking that keeps the BatchNorm statistics exact.
    x2 = jax.random.normal(kx, (2, 7, out_size), jnp.float32)
    y2 = jax.block_until_ready(mlp_forward(x2, params, tm=8))
    y2_ref = mlp_reference(x2, params)
    assert jnp.allclose(y2, y2_ref, atol=1e-2, rtol=1e-2), \
        float(jnp.max(jnp.abs(y2 - y2_ref)))

    print("KERNEL_OK")
</pallas_src>

<mosaic_0001>
module attributes {stable_mosaic.version = 11 : i64} {
  func.func @_matmul_stats_kernel(%arg0: i32, %arg1: memref<512x128xbf16, #tpu.memory_space<vmem>>, %arg2: memref<128x128xbf16, #tpu.memory_space<vmem>>, %arg3: memref<512x128xf32, #tpu.memory_space<vmem>>, %arg4: memref<2x128xf32, #tpu.memory_space<vmem>>) attributes {dimension_semantics = [#tpu.dimension_semantics<arbitrary>], iteration_bounds = array<i64: 2>, scalar_prefetch = 0 : i64, scratch_operands = 0 : i64, tpu.core_type = #tpu.core_type<tc>, window_params = [{transform_indices = @transform_0, window_bounds = array<i64: 512, 128>}, {pipeline_mode = #tpu.pipeline_mode<synchronous>, transform_indices = @transform_1, window_bounds = array<i64: 128, 128>}, {transform_indices = @transform_2, window_bounds = array<i64: 512, 128>}, {pipeline_mode = #tpu.pipeline_mode<synchronous>, transform_indices = @transform_3, window_bounds = array<i64: 2, 128>}]} {
    %c0 = arith.constant 0 : index
    %c0_0 = arith.constant 0 : index
    %0 = vector.load %arg1[%c0, %c0_0] : memref<512x128xbf16, #tpu.memory_space<vmem>>, vector<512x128xbf16>
    %c0_1 = arith.constant 0 : index
    %c0_2 = arith.constant 0 : index
    %1 = vector.load %arg2[%c0_1, %c0_2] : memref<128x128xbf16, #tpu.memory_space<vmem>>, vector<128x128xbf16>
    %cst = arith.constant dense<0.000000e+00> : vector<512x128xf32>
    %2 = tpu.matmul %0, %1, %cst {dimension_numbers = #tpu.dot_dimension_numbers<[1], [0], [0], [1], [0, 0, 1, 1], [], []>} : vector<512x128xbf16>, vector<128x128xbf16>, vector<512x128xf32> -> vector<512x128xf32>
    %c0_3 = arith.constant 0 : index
    %c0_4 = arith.constant 0 : index
    %3 = vector.load %arg3[%c0_3, %c0_4] : memref<512x128xf32, #tpu.memory_space<vmem>>, vector<512x128xf32>
    tpu.vector_store %arg3[%c0_3, %c0_4], %2 {strides = array<i32>} : memref<512x128xf32, #tpu.memory_space<vmem>>, vector<512x128xf32>,
    %c0_i32 = arith.constant 0 : i32
    %4 = arith.cmpi eq, %arg0, %c0_i32 : i32
    %5 = arith.extui %4 : i1 to i32
    %c0_i32_5 = arith.constant 0 : i32
    %6 = arith.cmpi ne, %5, %c0_i32_5 : i32
    scf.if %6 {
      %cst_12 = arith.constant 0.000000e+00 : f32
      %16 = vector.broadcast %cst_12 : f32 to vector<2x128xf32>
      %c0_13 = arith.constant 0 : index
      %c0_14 = arith.constant 0 : index
      %17 = vector.load %arg4[%c0_13, %c0_14] : memref<2x128xf32, #tpu.memory_space<vmem>>, vector<2x128xf32>
      tpu.vector_store %arg4[%c0_13, %c0_14], %16 {strides = array<i32>} : memref<2x128xf32, #tpu.memory_space<vmem>>, vector<2x128xf32>,
    } else {
    }
    %cst_6 = arith.constant dense<0.000000e+00> : vector<128xf32>
    %7 = vector.multi_reduction <add>, %2, %cst_6 [0] : vector<512x128xf32> to vector<128xf32>
    %8 = vector.shape_cast %7 : vector<128xf32> to vector<1x128xf32>
    %9 = arith.mulf %2, %2 : vector<512x128xf32>
    %cst_7 = arith.constant dense<0.000000e+00> : vector<128xf32>
    %10 = vector.multi_reduction <add>, %9, %cst_7 [0] : vector<512x128xf32> to vector<128xf32>
    %11 = vector.shape_cast %10 : vector<128xf32> to vector<1x128xf32>
    %c0_8 = arith.constant 0 : index
    %c0_9 = arith.constant 0 : index
    %12 = vector.load %arg4[%c0_8, %c0_9] : memref<2x128xf32, #tpu.memory_space<vmem>>, vector<2x128xf32>
    %13 = tpu.concatenate %8, %11 in 0 : vector<1x128xf32>, vector<1x128xf32> -> vector<2x128xf32>
    %14 = arith.addf %12, %13 : vector<2x128xf32>
    %c0_10 = arith.constant 0 : index
    %c0_11 = arith.constant 0 : index
    %15 = vector.load %arg4[%c0_10, %c0_11] : memref<2x128xf32, #tpu.memory_space<vmem>>, vector<2x128xf32>
    tpu.vector_store %arg4[%c0_10, %c0_11], %14 {strides = array<i32>} : memref<2x128xf32, #tpu.memory_space<vmem>>, vector<2x128xf32>,
    return
  }
  func.func @transform_0(%arg0: i32) -> (i32, i32) {
    %c0_i32 = arith.constant 0 : i32
    %c0_i32_0 = arith.constant 0 : i32
    return %arg0, %c0_i32 : i32, i32
  }
  func.func @transform_1(%arg0: i32) -> (i32, i32) {
    %c0_i32 = arith.constant 0 : i32
    %c0_i32_0 = arith.constant 0 : i32
    %c0_i32_1 = arith.constant 0 : i32
    return %c0_i32, %c0_i32_0 : i32, i32
  }
  func.func @transform_2(%arg0: i32) -> (i32, i32) {
    %c0_i32 = arith.constant 0 : i32
    %c0_i32_0 = arith.constant 0 : i32
    return %arg0, %c0_i32 : i32, i32
  }
  func.func @transform_3(%arg0: i32) -> (i32, i32) {
    %c0_i32 = arith.constant 0 : i32
    %c0_i32_0 = arith.constant 0 : i32
    %c0_i32_1 = arith.constant 0 : i32
    return %c0_i32, %c0_i32_0 : i32, i32
  }
}

module attributes {stable_mosaic.version = 11 : i64} {
  func.func @_bn_relu_matmul_bias_kernel(%arg0: i32, %arg1: memref<512x128xf32, #tpu.memory_space<vmem>>, %arg2: memref<1x128xf32, #tpu.memory_space<vmem>>, %arg3: memref<1x128xf32, #tpu.memory_space<vmem>>, %arg4: memref<128x128xbf16, #tpu.memory_space<vmem>>, %arg5: memref<1x128xf32, #tpu.memory_space<vmem>>, %arg6: memref<512x128xf32, #tpu.memory_space<vmem>>) attributes {dimension_semantics = [#tpu.dimension_semantics<parallel>], iteration_bounds = array<i64: 2>, scalar_prefetch = 0 : i64, scratch_operands = 0 : i64, tpu.core_type = #tpu.core_type<tc>, window_params = [{transform_indices = @transform_0, window_bounds = array<i64: 512, 128>}, {pipeline_mode = #tpu.pipeline_mode<synchronous>, transform_indices = @transform_1, window_bounds = array<i64: 1, 128>}, {pipeline_mode = #tpu.pipeline_mode<synchronous>, transform_indices = @transform_2, window_bounds = array<i64: 1, 128>}, {pipeline_mode = #tpu.pipeline_mode<synchronous>, transform_indices = @transform_3, window_bounds = array<i64: 128, 128>}, {pipeline_mode = #tpu.pipeline_mode<synchronous>, transform_indices = @transform_4, window_bounds = array<i64: 1, 128>}, {transform_indices = @transform_5, window_bounds = array<i64: 512, 128>}]} {
    %c0 = arith.constant 0 : index
    %c0_0 = arith.constant 0 : index
    %0 = vector.load %arg1[%c0, %c0_0] : memref<512x128xf32, #tpu.memory_space<vmem>>, vector<512x128xf32>
    %c0_1 = arith.constant 0 : index
    %c0_2 = arith.constant 0 : index
    %1 = vector.load %arg2[%c0_1, %c0_2] : memref<1x128xf32, #tpu.memory_space<vmem>>, vector<1x128xf32>
    %2 = vector.broadcast %1 : vector<1x128xf32> to vector<512x128xf32>
    %3 = arith.mulf %0, %2 : vector<512x128xf32>
    %c0_3 = arith.constant 0 : index
    %c0_4 = arith.constant 0 : index
    %4 = vector.load %arg3[%c0_3, %c0_4] : memref<1x128xf32, #tpu.memory_space<vmem>>, vector<1x128xf32>
    %5 = vector.broadcast %4 : vector<1x128xf32> to vector<512x128xf32>
    %6 = arith.addf %3, %5 : vector<512x128xf32>
    %cst = arith.constant 0.000000e+00 : f32
    %7 = vector.broadcast %cst : f32 to vector<512x128xf32>
    %8 = arith.maximumf %6, %7 : vector<512x128xf32>
    %9 = arith.truncf %8 : vector<512x128xf32> to vector<512x128xbf16>
    %c0_5 = arith.constant 0 : index
    %c0_6 = arith.constant 0 : index
    %10 = vector.load %arg4[%c0_5, %c0_6] : memref<128x128xbf16, #tpu.memory_space<vmem>>, vector<128x128xbf16>
    %cst_7 = arith.constant dense<0.000000e+00> : vector<512x128xf32>
    %11 = tpu.matmul %9, %10, %cst_7 {dimension_numbers = #tpu.dot_dimension_numbers<[1], [0], [0], [1], [0, 0, 1, 1], [], []>} : vector<512x128xbf16>, vector<128x128xbf16>, vector<512x128xf32> -> vector<512x128xf32>
    %c0_8 = arith.constant 0 : index
    %c0_9 = arith.constant 0 : index
    %12 = vector.load %arg5[%c0_8, %c0_9] : memref<1x128xf32, #tpu.memory_space<vmem>>, vector<1x128xf32>
    %13 = vector.broadcast %12 : vector<1x128xf32> to vector<512x128xf32>
    %14 = arith.addf %11, %13 : vector<512x128xf32>
    %c0_10 = arith.constant 0 : index
    %c0_11 = arith.constant 0 : index
    %15 = vector.load %arg6[%c0_10, %c0_11] : memref<512x128xf32, #tpu.memory_space<vmem>>, vector<512x128xf32>
    tpu.vector_store %arg6[%c0_10, %c0_11], %14 {strides = array<i32>} : memref<512x128xf32, #tpu.memory_space<vmem>>, vector<512x128xf32>,
    return
  }
  func.func @transform_0(%arg0: i32) -> (i32, i32) {
    %c0_i32 = arith.constant 0 : i32
    %c0_i32_0 = arith.constant 0 : i32
    return %arg0, %c0_i32 : i32, i32
  }
  func.func @transform_1(%arg0: i32) -> (i32, i32) {
    %c0_i32 = arith.constant 0 : i32
    %c0_i32_0 = arith.constant 0 : i32
    %c0_i32_1 = arith.constant 0 : i32
    return %c0_i32, %c0_i32_0 : i32, i32
  }
  func.func @transform_2(%arg0: i32) -> (i32, i32) {
    %c0_i32 = arith.constant 0 : i32
    %c0_i32_0 = arith.constant 0 : i32
    %c0_i32_1 = arith.constant 0 : i32
    return %c0_i32, %c0_i32_0 : i32, i32
  }
  func.func @transform_3(%arg0: i32) -> (i32, i32) {
    %c0_i32 = arith.constant 0 : i32
    %c0_i32_0 = arith.constant 0 : i32
    %c0_i32_1 = arith.constant 0 : i32
    return %c0_i32, %c0_i32_0 : i32, i32
  }
  func.func @transform_4(%arg0: i32) -> (i32, i32) {
    %c0_i32 = arith.constant 0 : i32
    %c0_i32_0 = arith.constant 0 : i32
    %c0_i32_1 = arith.constant 0 : i32
    return %c0_i32, %c0_i32_0 : i32, i32
  }
  func.func @transform_5(%arg0: i32) -> (i32, i32) {
    %c0_i32 = arith.constant 0 : i32
    %c0_i32_0 = arith.constant 0 : i32
    return %arg0, %c0_i32 : i32, i32
  }
}

module attributes {stable_mosaic.version = 11 : i64} {
  func.func @_bn_relu_matmul_stats_kernel(%arg0: i32, %arg1: memref<512x128xf32, #tpu.memory_space<vmem>>, %arg2: memref<1x128xf32, #tpu.memory_space<vmem>>, %arg3: memref<1x128xf32, #tpu.memory_space<vmem>>, %arg4: memref<128x128xbf16, #tpu.memory_space<vmem>>, %arg5: memref<512x128xf32, #tpu.memory_space<vmem>>, %arg6: memref<2x128xf32, #tpu.memory_space<vmem>>) attributes {dimension_semantics = [#tpu.dimension_semantics<arbitrary>], iteration_bounds = array<i64: 2>, scalar_prefetch = 0 : i64, scratch_operands = 0 : i64, tpu.core_type = #tpu.core_type<tc>, window_params = [{transform_indices = @transform_0, window_bounds = array<i64: 512, 128>}, {pipeline_mode = #tpu.pipeline_mode<synchronous>, transform_indices = @transform_1, window_bounds = array<i64: 1, 128>}, {pipeline_mode = #tpu.pipeline_mode<synchronous>, transform_indices = @transform_2, window_bounds = array<i64: 1, 128>}, {pipeline_mode = #tpu.pipeline_mode<synchronous>, transform_indices = @transform_3, window_bounds = array<i64: 128, 128>}, {transform_indices = @transform_4, window_bounds = array<i64: 512, 128>}, {pipeline_mode = #tpu.pipeline_mode<synchronous>, transform_indices = @transform_5, window_bounds = array<i64: 2, 128>}]} {
    %c0 = arith.constant 0 : index
    %c0_0 = arith.constant 0 : index
    %0 = vector.load %arg1[%c0, %c0_0] : memref<512x128xf32, #tpu.memory_space<vmem>>, vector<512x128xf32>
    %c0_1 = arith.constant 0 : index
    %c0_2 = arith.constant 0 : index
    %1 = vector.load %arg2[%c0_1, %c0_2] : memref<1x128xf32, #tpu.memory_space<vmem>>, vector<1x128xf32>
    %2 = vector.broadcast %1 : vector<1x128xf32> to vector<512x128xf32>
    %3 = arith.mulf %0, %2 : vector<512x128xf32>
    %c0_3 = arith.constant 0 : index
    %c0_4 = arith.constant 0 : index
    %4 = vector.load %arg3[%c0_3, %c0_4] : memref<1x128xf32, #tpu.memory_space<vmem>>, vector<1x128xf32>
    %5 = vector.broadcast %4 : vector<1x128xf32> to vector<512x128xf32>
    %6 = arith.addf %3, %5 : vector<512x128xf32>
    %cst = arith.constant 0.000000e+00 : f32
    %7 = vector.broadcast %cst : f32 to vector<512x128xf32>
    %8 = arith.maximumf %6, %7 : vector<512x128xf32>
    %9 = arith.truncf %8 : vector<512x128xf32> to vector<512x128xbf16>
    %c0_5 = arith.constant 0 : index
    %c0_6 = arith.constant 0 : index
    %10 = vector.load %arg4[%c0_5, %c0_6] : memref<128x128xbf16, #tpu.memory_space<vmem>>, vector<128x128xbf16>
    %cst_7 = arith.constant dense<0.000000e+00> : vector<512x128xf32>
    %11 = tpu.matmul %9, %10, %cst_7 {dimension_numbers = #tpu.dot_dimension_numbers<[1], [0], [0], [1], [0, 0, 1, 1], [], []>} : vector<512x128xbf16>, vector<128x128xbf16>, vector<512x128xf32> -> vector<512x128xf32>
    %c0_8 = arith.constant 0 : index
    %c0_9 = arith.constant 0 : index
    %12 = vector.load %arg5[%c0_8, %c0_9] : memref<512x128xf32, #tpu.memory_space<vmem>>, vector<512x128xf32>
    tpu.vector_store %arg5[%c0_8, %c0_9], %11 {strides = array<i32>} : memref<512x128xf32, #tpu.memory_space<vmem>>, vector<512x128xf32>,
    %c0_i32 = arith.constant 0 : i32
    %13 = arith.cmpi eq, %arg0, %c0_i32 : i32
    %14 = arith.extui %13 : i1 to i32
    %c0_i32_10 = arith.constant 0 : i32
    %15 = arith.cmpi ne, %14, %c0_i32_10 : i32
    scf.if %15 {
      %cst_17 = arith.constant 0.000000e+00 : f32
      %25 = vector.broadcast %cst_17 : f32 to vector<2x128xf32>
      %c0_18 = arith.constant 0 : index
      %c0_19 = arith.constant 0 : index
      %26 = vector.load %arg6[%c0_18, %c0_19] : memref<2x128xf32, #tpu.memory_space<vmem>>, vector<2x128xf32>
      tpu.vector_store %arg6[%c0_18, %c0_19], %25 {strides = array<i32>} : memref<2x128xf32, #tpu.memory_space<vmem>>, vector<2x128xf32>,
    } else {
    }
    %cst_11 = arith.constant dense<0.000000e+00> : vector<128xf32>
    %16 = vector.multi_reduction <add>, %11, %cst_11 [0] : vector<512x128xf32> to vector<128xf32>
    %17 = vector.shape_cast %16 : vector<128xf32> to vector<1x128xf32>
    %18 = arith.mulf %11, %11 : vector<512x128xf32>
    %cst_12 = arith.constant dense<0.000000e+00> : vector<128xf32>
    %19 = vector.multi_reduction <add>, %18, %cst_12 [0] : vector<512x128xf32> to vector<128xf32>
    %20 = vector.shape_cast %19 : vector<128xf32> to vector<1x128xf32>
    %c0_13 = arith.constant 0 : index
    %c0_14 = arith.constant 0 : index
    %21 = vector.load %arg6[%c0_13, %c0_14] : memref<2x128xf32, #tpu.memory_space<vmem>>, vector<2x128xf32>
    %22 = tpu.concatenate %17, %20 in 0 : vector<1x128xf32>, vector<1x128xf32> -> vector<2x128xf32>
    %23 = arith.addf %21, %22 : vector<2x128xf32>
    %c0_15 = arith.constant 0 : index
    %c0_16 = arith.constant 0 : index
    %24 = vector.load %arg6[%c0_15, %c0_16] : memref<2x128xf32, #tpu.memory_space<vmem>>, vector<2x128xf32>
    tpu.vector_store %arg6[%c0_15, %c0_16], %23 {strides = array<i32>} : memref<2x128xf32, #tpu.memory_space<vmem>>, vector<2x128xf32>,
    return
  }
  func.func @transform_0(%arg0: i32) -> (i32, i32) {
    %c0_i32 = arith.constant 0 : i32
    %c0_i32_0 = arith.constant 0 : i32
    return %arg0, %c0_i32 : i32, i32
  }
  func.func @transform_1(%arg0: i32) -> (i32, i32) {
    %c0_i32 = arith.constant 0 : i32
    %c0_i32_0 = arith.constant 0 : i32
    %c0_i32_1 = arith.constant 0 : i32
    return %c0_i32, %c0_i32_0 : i32, i32
  }
  func.func @transform_2(%arg0: i32) -> (i32, i32) {
    %c0_i32 = arith.constant 0 : i32
    %c0_i32_0 = arith.constant 0 : i32
    %c0_i32_1 = arith.constant 0 : i32
    return %c0_i32, %c0_i32_0 : i32, i32
  }
  func.func @transform_3(%arg0: i32) -> (i32, i32) {
    %c0_i32 = arith.constant 0 : i32
    %c0_i32_0 = arith.constant 0 : i32
    %c0_i32_1 = arith.constant 0 : i32
    return %c0_i32, %c0_i32_0 : i32, i32
  }
  func.func @transform_4(%arg0: i32) -> (i32, i32) {
    %c0_i32 = arith.constant 0 : i32
    %c0_i32_0 = arith.constant 0 : i32
    return %arg0, %c0_i32 : i32, i32
  }
  func.func @transform_5(%arg0: i32) -> (i32, i32) {
    %c0_i32 = arith.constant 0 : i32
    %c0_i32_0 = arith.constant 0 : i32
    %c0_i32_1 = arith.constant 0 : i32
    return %c0_i32, %c0_i32_0 : i32, i32
  }
}

</mosaic_0001>

<bundles_post_ra>
// kernel: mlp_forward.5
= control target key start
LH: loop header
LB: loop body
LE: loop exit
PB: predicated region body
PF: predicated region fallthrough
CT: control target
= control target key end

     0   :  { %s1223_s18 = smov 0   ;;  %s1651_s0 = inlined_call_operand.vmem [shape: f32[1024,128], index: 0, kind: input, shape index: {}]   ;;  %s1652_s1 = inlined_call_operand.vmem [shape: f32[1,128], index: 1, kind: input, shape index: {}]   ;;  %s1653_s2 = inlined_call_operand.vmem [shape: f32[1,128], index: 2, kind: input, shape index: {}]   ;;  %s1654_s3 = inlined_call_operand.vmem [shape: bf16[128,128], index: 3, kind: input, shape index: {}]   ;;  %s1655_s4 = inlined_call_operand.vmem [shape: f32[1,128], index: 4, kind: input, shape index: {}]   ;;  %s1656_s5 = inlined_call_operand.vmem [shape: f32[1024,128], index: 5, kind: output, shape index: {}]  }
   0x1 LB: > { %s1011_s19 = sadd.s32 4294967295, %s1191_s18   ;;  %p1015_p0 = scmp.ge.s32.totalorder %s1191_s18, 1  ;;  %s1191_s18 = sphi %s1223_s18, %s15_s18  }
   0x2   : > { %p188_p1 = scmp.lt.s32.totalorder %s1191_s18, 3 }
   0x4   : > { %p189_p2 = pnand %p1015_p0, %p188_p1 }
   0x5   : > { %v1177_v0 = vld [vmem:[%s1654_s3] sm:$0xff] (!%p189_p2)   ;;  %s1016_s22 = sshll.u32 (!%p189_p2), %s1011_s19, 6  ;;  %v1178_v1 = vld [vmem:[%s1654_s3 + $0x8] sm:$0xff] (!%p189_p2)   ;;  %v1179_v2 = vld [vmem:[%s1654_s3 + $0x10] sm:$0xff] (!%p189_p2)  }
   0x6   : > { %192 = sbr.rel (%p189_p2) target bundleno = 313 (0x139), region = 40  ;;  %p217_p3 = scmp.lt.s32.totalorder (!%p189_p2), %s1016_s22, 127  ;;  %1073 = vmatprep.subr.bf16.mxu0 (!%p189_p2), %v1177_v0  ;;  %1153 = vmatprep.subr.bf16.mxu1 (!%p189_p2), %v1177_v0  ;;  %v1180_v3 = vld [vmem:[%s1654_s3 + $0x18] sm:$0xff] (!%p189_p2)   ;;  %v1258_v6 = vld [vmem:[%s1652_s1] ss:$0 sm:$0xff] (!%p189_p2)  ;;  %v1182_v39 = vld [vmem:[%s1654_s3 + $0x28] sm:$0xff] (!%p189_p2)  }
   0x7   : > { %1074 = vmatpush3.bf16.msra.mxu0 (!%p189_p2), %v1177_v0  ;;  %1161 = vmatpush3.bf16.msra.mxu1 (!%p189_p2), %v1177_v0  ;;  %v1265_v9 = vld [vmem:[%s1653_s2] ss:$0 sm:$0xff] (!%p189_p2)  ;;  %v1183_v56 = vld [vmem:[%s1654_s3 + $0x30] sm:$0xff] (!%p189_p2)  }
   0x8   : > { %1075 = vmatprep.subr.bf16.mxu0 (!%p189_p2), %v1178_v1  ;;  %1154 = vmatprep.subr.bf16.mxu1 (!%p189_p2), %v1178_v1  ;;  %v1181_v21 = vld [vmem:[%s1654_s3 + $0x20] sm:$0xff] (!%p189_p2)  }
   0xb   : > { %1076 = vmatpush3.bf16.msra.mxu0 (!%p189_p2), %v1178_v1  ;;  %1162 = vmatpush3.bf16.msra.mxu1 (!%p189_p2), %v1178_v1 }
   0xc   : > { %1077 = vmatprep.subr.bf16.mxu0 (!%p189_p2), %v1179_v2  ;;  %1155 = vmatprep.subr.bf16.mxu1 (!%p189_p2), %v1179_v2 }
   0xd   : > { %s1658_s22 = smov (!%p217_p3, %s1016_s22), 127 }
   0xe   : > { %s1017_s27 = sshll.u32 %s1658_s22, 3 }
   0xf   : > { %s1248_s30 = scalar_lea.vmem %s1651_s0, %s1017_s27  ;;  %1078 = vmatpush3.bf16.msra.mxu0 %v1179_v2  ;;  %1163 = vmatpush3.bf16.msra.mxu1 %v1179_v2  ;;  %s1518_s26 = scalar_lea.vmem %s1656_s5, %s1017_s27 }
  0x10   : > { %v229_v4 = vld [vmem:[%s1248_s30] sm:$0xff]  ;;  %v230_v5 = vld [vmem:[%s1248_s30 + $0x8] sm:$0xff]  ;;  %v231_v14 = vld [vmem:[%s1248_s30 + $0x10] sm:$0xff]  ;;  %1079 = vmatprep.subr.bf16.mxu0 %v1180_v3  ;;  %1156 = vmatprep.subr.bf16.mxu1 %v1180_v3 }
  0x11   : > { %v300_v7 = vmul.f32 %v1258_v6, %v229_v4  ;;  %v301_v8 = vmul.f32 %v1258_v6, %v230_v5  ;;  %v261_v10 = vld [vmem:[%s1248_s30 + $0x100] sm:$0xff]  ;;  %v262_v11 = vld [vmem:[%s1248_s30 + $0x108] sm:$0xff]  ;;  %v232_v15 = vld [vmem:[%s1248_s30 + $0x18] sm:$0xff]  ;;  %v302_v19 = vmul.f32 %v1258_v6, %v231_v14 }
  0x12   : > { %v332_v12 = vmul.f32 %v1258_v6, %v261_v10  ;;  %v333_v13 = vmul.f32 %v1258_v6, %v262_v11  ;;  %v263_v16 = vld [vmem:[%s1248_s30 + $0x110] sm:$0xff]  ;;  %v264_v20 = vld [vmem:[%s1248_s30 + $0x118] sm:$0xff]  ;;  %v303_v24 = vmul.f32 %v1258_v6, %v232_v15  ;;  %v233_v25 = vld [vmem:[%s1248_s30 + $0x20] sm:$0xff] }
  0x13   : > { %v371_v17 = vadd.f32 %v1265_v9, %v300_v7  ;;  %v372_v18 = vadd.f32 %v1265_v9, %v301_v8  ;;  %v334_v28 = vmul.f32 %v1258_v6, %v263_v16  ;;  %v234_v29 = vld [vmem:[%s1248_s30 + $0x28] sm:$0xff]  ;;  %v335_v32 = vmul.f32 %v1258_v6, %v264_v20  ;;  %v265_v33 = vld [vmem:[%s1248_s30 + $0x120] sm:$0xff]  ;;  %1080 = vmatpush3.bf16.msra.mxu0 %v1180_v3  ;;  %v235_v38 = vld [vmem:[%s1248_s30 + $0x30] sm:$0xff] }
  0x14   : > { %v403_v22 = vadd.f32 %v1265_v9, %v332_v12  ;;  %v404_v23 = vadd.f32 %v1265_v9, %v333_v13  ;;  %v266_v34 = vld [vmem:[%s1248_s30 + $0x128] sm:$0xff]  ;;  %1164 = vmatpush3.bf16.msra.mxu1 %v1180_v3  ;;  %v373_v36 = vadd.f32 %v1265_v9, %v302_v19  ;;  %v304_v37 = vmul.f32 %v1258_v6, %v233_v25  ;;  %v236_v43 = vld [vmem:[%s1248_s30 + $0x38] sm:$0xff]  ;;  %v267_v47 = vld [vmem:[%s1248_s30 + $0x130] sm:$0xff] }
  0x15   : > { %v435_v26 = vmax.f32 %v371_v17, 0.0  ;;  %v436_v27 = vmax.f32 %v372_v18, 0.0  ;;  %1081 = vmatprep.subr.bf16.mxu0 %v1181_v21  ;;  %1157 = vmatprep.subr.bf16.mxu1 %v1181_v21  ;;  %v374_v41 = vadd.f32 %v1265_v9, %v303_v24  ;;  %v305_v42 = vmul.f32 %v1258_v6, %v234_v29  ;;  %v268_v52 = vld [vmem:[%s1248_s30 + $0x138] sm:$0xff]  ;;  %v237_v61 = vld [vmem:[%s1248_s30 + $0x40] sm:$0xff]  ;;  %v238_v1 = vld [vmem:[%s1248_s30 + $0x48] sm:$0xff] }
  0x16   : > { %v467_v30 = vmax.f32 %v403_v22, 0.0  ;;  %v468_v31 = vmax.f32 %v404_v23, 0.0  ;;  %v405_v44 = vadd.f32 %v1265_v9, %v334_v28  ;;  %v336_v45 = vmul.f32 %v1258_v6, %v265_v33  ;;  %v269_v7 = vld [vmem:[%s1248_s30 + $0x140] sm:$0xff]  ;;  %v270_v8 = vld [vmem:[%s1248_s30 + $0x148] sm:$0xff]  ;;  %v239_v14 = vld [vmem:[%s1248_s30 + $0x50] sm:$0xff] }
  0x17   : > { %v499_v35 = vpack.c.bf16 %v436_v27, %v435_v26  ;;  %v337_v46 = vmul.f32 %v1258_v6, %v266_v34  ;;  %v406_v48 = vadd.f32 %v1265_v9, %v335_v32  ;;  %v375_v49 = vadd.f32 %v1265_v9, %v304_v37  ;;  %1082 = vmatpush3.bf16.msra.mxu0 %v1181_v21  ;;  %v240_v15 = vld [vmem:[%s1248_s30 + $0x58] sm:$0xff] }
  0x18   : > { %v515_v40 = vpack.c.bf16 %v468_v31, %v467_v30  ;;  %v376_v50 = vadd.f32 %v1265_v9, %v305_v42  ;;  %v306_v51 = vmul.f32 %v1258_v6, %v235_v38  ;;  %1165 = vmatpush3.bf16.msra.mxu1 %v1181_v21  ;;  %v407_v53 = vadd.f32 %v1265_v9, %v336_v45  ;;  %v1184_v16 = vld [vmem:[%s1654_s3 + $0x38] sm:$0xff]   ;;  %v271_v21 = vld [vmem:[%s1248_s30 + $0x150] sm:$0xff]  ;;  %v241_v31 = vld [vmem:[%s1248_s30 + $0x60] sm:$0xff] }
  0x19   : > { %1089 = vmatprep.mubr.bf16.mxu0 %v499_v35  ;;  %v408_v54 = vadd.f32 %v1265_v9, %v337_v46  ;;  %v307_v55 = vmul.f32 %v1258_v6, %v236_v43  ;;  %1083 = vmatprep.subr.bf16.mxu0 %v1182_v39  ;;  %v437_v57 = vmax.f32 %v373_v36, 0.0  ;;  %v438_v58 = vmax.f32 %v374_v41, 0.0  ;;  %v272_v26 = vld [vmem:[%s1248_s30 + $0x158] sm:$0xff]  ;;  %v242_v35 = vld [vmem:[%s1248_s30 + $0x68] sm:$0xff]  ;;  %v243_v45 = vld [vmem:[%s1248_s30 + $0x70] sm:$0xff] }
  0x1a   : > { %1121 = vmatprep.mubr.bf16.mxu1 %v515_v40  ;;  %1158 = vmatprep.subr.bf16.mxu1 %v1182_v39  ;;  %v377_v59 = vadd.f32 %v1265_v9, %v306_v51  ;;  %v338_v60 = vmul.f32 %v1258_v6, %v267_v47  ;;  %v469_v62 = vmax.f32 %v405_v44, 0.0  ;;  %v339_v0 = vmul.f32 %v1258_v6, %v268_v52  ;;  %v274_v40 = vld [vmem:[%s1248_s30 + $0x168] sm:$0xff] }
  0x1b   : > { %v378_v63 = vadd.f32 %v1265_v9, %v307_v55  ;;  %v470_v2 = vmax.f32 %v406_v48, 0.0  ;;  %v439_v3 = vmax.f32 %v375_v49, 0.0  ;;  %v440_v4 = vmax.f32 %v376_v50, 0.0  ;;  %1084 = vmatpush3.bf16.msra.mxu0 %v1182_v39  ;;  %v244_v50 = vld [vmem:[%s1248_s30 + $0x78] sm:$0xff] }
  0x1c   : > { %v409_v5 = vadd.f32 %v1265_v9, %v338_v60  ;;  %1166 = vmatpush3.bf16.msra.mxu1 %v1182_v39  ;;  %v471_v10 = vmax.f32 %v407_v53, 0.0  ;;  %v472_v11 = vmax.f32 %v408_v54, 0.0  ;;  %v410_v12 = vadd.f32 %v1265_v9, %v339_v0  ;;  %1085 = vmatprep.subr.bf16.mxu0 %v1183_v56  ;;  %v273_v39 = vld [vmem:[%s1248_s30 + $0x160] sm:$0xff] }
  0x1d   : > { %v308_v13 = vmul.f32 %v1258_v6, %v237_v61  ;;  %1159 = vmatprep.subr.bf16.mxu1 %v1183_v56  ;;  %v500_v17 = vpack.c.bf16 %v438_v58, %v437_v57  ;;  %v441_v18 = vmax.f32 %v377_v59, 0.0  ;;  %v442_v19 = vmax.f32 %v378_v63, 0.0  ;;  %v275_v59 = vld [vmem:[%s1248_s30 + $0x170] sm:$0xff] }
  0x1e   : > { %v309_v20 = vmul.f32 %v1258_v6, %v238_v1  ;;  %v473_v22 = vmax.f32 %v409_v5, 0.0  ;;  %v474_v23 = vmax.f32 %v410_v12, 0.0  ;;  %v340_v24 = vmul.f32 %v1258_v6, %v269_v7  ;;  %v245_v5 = vld [vmem:[%s1248_s30 + $0x80] sm:$0xff]  ;;  %v246_v12 = vld [vmem:[%s1248_s30 + $0x88] sm:$0xff] }
  0x1f   : > { %v341_v25 = vmul.f32 %v1258_v6, %v270_v8  ;;  %v516_v27 = vpack.c.bf16 %v470_v2, %v469_v62  ;;  %v501_v28 = vpack.c.bf16 %v440_v4, %v439_v3  ;;  %v310_v29 = vmul.f32 %v1258_v6, %v239_v14  ;;  %1086 = vmatpush3.bf16.msra.mxu0 %v1183_v56  ;;  %v276_v4 = vld [vmem:[%s1248_s30 + $0x178] sm:$0xff] }
  0x20   : > { %v311_v30 = vmul.f32 %v1258_v6, %v240_v15  ;;  %1167 = vmatpush3.bf16.msra.mxu1 %v1183_v56  ;;  %v517_v32 = vpack.c.bf16 %v472_v11, %v471_v10  ;;  %v1339_v33 = vadd.f32 %v1265_v9, %v308_v13  ;;  %v342_v34 = vmul.f32 %v1258_v6, %v271_v21  ;;  %v277_v13 = vld [vmem:[%s1248_s30 + $0x180] sm:$0xff] }
  0x21   : > { %1087 = vmatprep.subr.bf16.mxu0 %v1184_v16  ;;  %1160 = vmatprep.subr.bf16.mxu1 %v1184_v16  ;;  %v1343_v36 = vpack.c.bf16 %v442_v19, %v441_v18  ;;  %v380_v37 = vadd.f32 %v1265_v9, %v309_v20  ;;  %v343_v38 = vmul.f32 %v1258_v6, %v272_v26  ;;  %v278_v18 = vld [vmem:[%s1248_s30 + $0x188] sm:$0xff]  ;;  %v247_v19 = vld [vmem:[%s1248_s30 + $0x90] sm:$0xff] }
  0x22   : > { %v1349_v41 = vpack.c.bf16 %v474_v23, %v473_v22  ;;  %v411_v42 = vadd.f32 %v1265_v9, %v340_v24  ;;  %v412_v43 = vadd.f32 %v1265_v9, %v341_v25  ;;  %v312_v44 = vmul.f32 %v1258_v6, %v241_v31  ;;  %v248_v24 = vld [vmem:[%s1248_s30 + $0x98] sm:$0xff] }
  0x23   : > { %v381_v46 = vadd.f32 %v1265_v9, %v310_v29  ;;  %v382_v47 = vadd.f32 %v1265_v9, %v311_v30  ;;  %v413_v48 = vadd.f32 %v1265_v9, %v342_v34  ;;  %v313_v49 = vmul.f32 %v1258_v6, %v242_v35  ;;  %1088 = vmatpush3.bf16.msra.mxu0 %v1184_v16  ;;  %v279_v29 = vld [vmem:[%s1248_s30 + $0x190] sm:$0xff]  ;;  %v280_v34 = vld [vmem:[%s1248_s30 + $0x198] sm:$0xff] }
  0x24   : > { %1168 = vmatpush3.bf16.msra.mxu1 %v1184_v16  ;;  %v443_v51 = vmax.f32 %v1339_v33, 0.0  ;;  %v414_v52 = vadd.f32 %v1265_v9, %v343_v38  ;;  %v344_v53 = vmul.f32 %v1258_v6, %v273_v39  ;;  %v345_v54 = vmul.f32 %v1258_v6, %v274_v40  ;;  %v249_v40 = vld [vmem:[%s1248_s30 + $0xa0] sm:$0xff] }
  0x25   : > { %v444_v55 = vmax.f32 %v380_v37, 0.0  ;;  %v383_v56 = vadd.f32 %v1265_v9, %v312_v44  ;;  %v384_v57 = vadd.f32 %v1265_v9, %v313_v49  ;;  %v314_v58 = vmul.f32 %v1258_v6, %v243_v45 }
  0x26   : > { %v475_v60 = vmax.f32 %v411_v42, 0.0  ;;  %v415_v61 = vadd.f32 %v1265_v9, %v344_v53  ;;  %v416_v62 = vadd.f32 %v1265_v9, %v345_v54  ;;  %v315_v63 = vmul.f32 %v1258_v6, %v244_v50  ;;  %1090 = vmatmul.mubr.bf16.vlgmr.msra.gmra.mrb[0].mxu0 %v500_v17  ;;  %v281_v50 = vld [vmem:[%s1248_s30 + $0x1a0] sm:$0xff] }
  0x27   : > { %1122 = vmatmul.mubr.bf16.vlgmr.msra.gmra.mrb[0].mxu1 %v516_v27  ;;  %v476_v0 = vmax.f32 %v412_v43, 0.0  ;;  %v445_v1 = vmax.f32 %v381_v46, 0.0  ;;  %v446_v2 = vmax.f32 %v382_v47, 0.0  ;;  %v385_v3 = vadd.f32 %v1265_v9, %v314_v58  ;;  %1093 = vmatprep.mubr.bf16.mxu0 %v501_v28  ;;  %v250_v46 = vld [vmem:[%s1248_s30 + $0xa8] sm:$0xff] }
  0x28   : > { %1125 = vmatprep.mubr.bf16.mxu1 %v517_v32  ;;  %v477_v7 = vmax.f32 %v413_v48, 0.0  ;;  %v478_v8 = vmax.f32 %v414_v52, 0.0  ;;  %v386_v10 = vadd.f32 %v1265_v9, %v315_v63  ;;  %v346_v11 = vmul.f32 %v1258_v6, %v275_v59 }
  0x29   : > { %v447_v14 = vmax.f32 %v383_v56, 0.0  ;;  %v448_v15 = vmax.f32 %v384_v57, 0.0  ;;  %v479_v16 = vmax.f32 %v415_v61, 0.0  ;;  %v480_v17 = vmax.f32 %v416_v62, 0.0 }
  0x2a   : > { %v449_v20 = vmax.f32 %v385_v3, 0.0  ;;  %v450_v21 = vmax.f32 %v386_v10, 0.0  ;;  %v347_v22 = vmul.f32 %v1258_v6, %v276_v4  ;;  %v316_v23 = vmul.f32 %v1258_v6, %v245_v5  ;;  %v283_v10 = vld [vmem:[%s1248_s30 + $0x1b0] sm:$0xff] }
  0x2b   : > { %v503_v25 = vpack.c.bf16 %v444_v55, %v443_v51  ;;  %v519_v26 = vpack.c.bf16 %v476_v0, %v475_v60  ;;  %v317_v27 = vmul.f32 %v1258_v6, %v246_v12  ;;  %v348_v28 = vmul.f32 %v1258_v6, %v277_v13  ;;  %v282_v51 = vld [vmem:[%s1248_s30 + $0x1a8] sm:$0xff]  ;;  %v251_v55 = vld [vmem:[%s1248_s30 + $0xb0] sm:$0xff] }
  0x2c   : > { %v504_v30 = vpack.c.bf16 %v446_v2, %v445_v1  ;;  %v417_v31 = vadd.f32 %v1265_v9, %v346_v11  ;;  %v349_v32 = vmul.f32 %v1258_v6, %v278_v18  ;;  %v318_v33 = vmul.f32 %v1258_v6, %v247_v19  ;;  %v252_v2 = vld [vmem:[%s1248_s30 + $0xb8] sm:$0xff] }
  0x2d   : > { %v520_v35 = vpack.c.bf16 %v478_v8, %v477_v7  ;;  %v505_v37 = vpack.c.bf16 %v448_v15, %v447_v14  ;;  %v521_v38 = vpack.c.bf16 %v480_v17, %v479_v16  ;;  %v319_v39 = vmul.f32 %v1258_v6, %v248_v24  ;;  %v284_v15 = vld [vmem:[%s1248_s30 + $0x1b8] sm:$0xff] }
  0x2e   : > { %v1392_v42 = vpack.c.bf16 %v450_v21, %v449_v20  ;;  %v418_v43 = vadd.f32 %v1265_v9, %v347_v22  ;;  %v387_v44 = vadd.f32 %v1265_v9, %v316_v23  ;;  %v350_v45 = vmul.f32 %v1258_v6, %v279_v29  ;;  %1094 = vmatmul.mubr.bf16.gmra.mrb[4].mxu0 %v1343_v36  ;;  %v253_v20 = vld [vmem:[%s1248_s30 + $0xc0] sm:$0xff]  ;;  %v254_v21 = vld [vmem:[%s1248_s30 + $0xc8] sm:$0xff] }
  0x2f   : > { %1126 = vmatmul.mubr.bf16.gmra.mrb[4].mxu1 %v1349_v41  ;;  %v388_v47 = vadd.f32 %v1265_v9, %v317_v27  ;;  %v419_v48 = vadd.f32 %v1265_v9, %v348_v28  ;;  %v351_v49 = vmul.f32 %v1258_v6, %v280_v34  ;;  %1097 = vmatprep.mubr.bf16.mxu0 %v503_v25  ;;  %v481_v52 = vmax.f32 %v417_v31, 0.0  ;;  %v285_v25 = vld [vmem:[%s1248_s30 + $0x1c0] sm:$0xff] }
  0x30   : > { %1129 = vmatprep.mubr.bf16.mxu1 %v519_v26  ;;  %v420_v53 = vadd.f32 %v1265_v9, %v349_v32  ;;  %v389_v54 = vadd.f32 %v1265_v9, %v318_v33  ;;  %v320_v36 = vmul.f32 %v1258_v6, %v249_v40  ;;  %v390_v41 = vadd.f32 %v1265_v9, %v319_v39  ;;  %v255_v26 = vld [vmem:[%s1248_s30 + $0xd0] sm:$0xff]  ;;  %v286_v32 = vld [vmem:[%s1248_s30 + $0x1c8] sm:$0xff] }
  0x31   : > { %v421_v56 = vadd.f32 %v1265_v9, %v350_v45  ;;  %v422_v57 = vadd.f32 %v1265_v9, %v351_v49  ;;  %v321_v58 = vmul.f32 %v1258_v6, %v250_v46  ;;  %v482_v59 = vmax.f32 %v418_v43, 0.0  ;;  %v288_v45 = vld [vmem:[%s1248_s30 + $0x1d8] sm:$0xff] }
  0x32   : > { %v391_v60 = vadd.f32 %v1265_v9, %v320_v36  ;;  %v352_v61 = vmul.f32 %v1258_v6, %v281_v50  ;;  %v353_v62 = vmul.f32 %v1258_v6, %v282_v51  ;;  %v451_v63 = vmax.f32 %v387_v44, 0.0  ;;  %v257_v50 = vld [vmem:[%s1248_s30 + $0xe0] sm:$0xff]  ;;  %v258_v36 = vld [vmem:[%s1248_s30 + $0xe8] sm:$0xff] }
  0x33   : > { %v452_v0 = vmax.f32 %v388_v47, 0.0  ;;  %v392_v1 = vadd.f32 %v1265_v9, %v321_v58  ;;  %v322_v3 = vmul.f32 %v1258_v6, %v251_v55  ;;  %v483_v4 = vmax.f32 %v419_v48, 0.0  ;;  %v289_v58 = vld [vmem:[%s1248_s30 + $0x1e0] sm:$0xff] }
  0x34   : > { %v484_v5 = vmax.f32 %v420_v53, 0.0  ;;  %v423_v7 = vadd.f32 %v1265_v9, %v352_v61  ;;  %v424_v8 = vadd.f32 %v1265_v9, %v353_v62  ;;  %v453_v11 = vmax.f32 %v389_v54, 0.0 }
  0x35   : > { %v454_v12 = vmax.f32 %v390_v41, 0.0  ;;  %v485_v13 = vmax.f32 %v421_v56, 0.0  ;;  %v486_v14 = vmax.f32 %v422_v57, 0.0  ;;  %v522_v16 = vpack.c.bf16 %v482_v59, %v481_v52  ;;  %v290_v59 = vld [vmem:[%s1248_s30 + $0x1e8] sm:$0xff] }
  0x36   : > { %v455_v17 = vmax.f32 %v391_v60, 0.0  ;;  %v456_v18 = vmax.f32 %v392_v1, 0.0  ;;  %v323_v19 = vmul.f32 %v1258_v6, %v252_v2  ;;  %1098 = vmatmul.mubr.bf16.gmra.mrb[8].mxu0 %v504_v30  ;;  %v507_v22 = vpack.c.bf16 %v452_v0, %v451_v63  ;;  %v256_v30 = vld [vmem:[%s1248_s30 + $0xd8] sm:$0xff]  ;;  %v259_v0 = vld [vmem:[%s1248_s30 + $0xf0] sm:$0xff] }
  0x37   : > { %1130 = vmatmul.mubr.bf16.gmra.mrb[8].mxu1 %v520_v35  ;;  %v1427_v23 = vadd.f32 %v1265_v9, %v322_v3  ;;  %v354_v24 = vmul.f32 %v1258_v6, %v283_v10  ;;  %1101 = vmatprep.mubr.bf16.mxu0 %v505_v37  ;;  %v523_v27 = vpack.c.bf16 %v484_v5, %v483_v4  ;;  %v487_v28 = vmax.f32 %v423_v7, 0.0  ;;  %v287_v37 = vld [vmem:[%s1248_s30 + $0x1d0] sm:$0xff]  ;;  %v260_v5 = vld [vmem:[%s1248_s30 + $0xf8] sm:$0xff] }
  0x38   : > { %1133 = vmatprep.mubr.bf16.mxu1 %v521_v38  ;;  %v488_v29 = vmax.f32 %v424_v8, 0.0  ;;  %v355_v31 = vmul.f32 %v1258_v6, %v284_v15  ;;  %v1435_v33 = vpack.c.bf16 %v454_v12, %v453_v11  ;;  %v1437_v34 = vpack.c.bf16 %v486_v14, %v485_v13 }
  0x39   : > { %v324_v35 = vmul.f32 %v1258_v6, %v253_v20  ;;  %v325_v39 = vmul.f32 %v1258_v6, %v254_v21  ;;  %v1442_v38 = vpack.c.bf16 %v456_v18, %v455_v17  ;;  %v1445_v40 = vadd.f32 %v1265_v9, %v323_v19 }
  0x3a   : > { %v356_v43 = vmul.f32 %v1258_v6, %v285_v25  ;;  %v326_v44 = vmul.f32 %v1258_v6, %v255_v26  ;;  %v457_v46 = vmax.f32 %v1427_v23, 0.0  ;;  %v1452_v47 = vadd.f32 %v1265_v9, %v354_v24 }
  0x3b   : > { %v357_v48 = vmul.f32 %v1258_v6, %v286_v32  ;;  %v327_v49 = vmul.f32 %v1258_v6, %v256_v30  ;;  %v525_v51 = vpack.c.bf16 %v488_v29, %v487_v28  ;;  %v1458_v52 = vadd.f32 %v1265_v9, %v355_v31 }
  0x3c   : > { %v397_v53 = vadd.f32 %v1265_v9, %v326_v44  ;;  %v358_v54 = vmul.f32 %v1258_v6, %v287_v37  ;;  %v1464_v55 = vadd.f32 %v1265_v9, %v324_v35  ;;  %v1467_v41 = vadd.f32 %v1265_v9, %v325_v39 }
  0x3d   : > { %v398_v56 = vadd.f32 %v1265_v9, %v327_v49  ;;  %v359_v57 = vmul.f32 %v1258_v6, %v288_v45  ;;  %v427_v60 = vadd.f32 %v1265_v9, %v356_v43  ;;  %v328_v63 = vmul.f32 %v1258_v6, %v257_v50 }
  0x3e   : > { %v461_v61 = vmax.f32 %v397_v53, 0.0  ;;  %v429_v62 = vadd.f32 %v1265_v9, %v358_v54  ;;  %1102 = vmatmul.mubr.bf16.gmra.mrb[12].mxu0 %v1392_v42  ;;  %v428_v1 = vadd.f32 %v1265_v9, %v357_v48  ;;  %v329_v4 = vmul.f32 %v1258_v6, %v258_v36  ;;  %v291_v42 = vld [vmem:[%s1248_s30 + $0x1f0] sm:$0xff] }
  0x3f   : > { %1134 = vmatmul.mubr.bf16.gmra.mrb[12].mxu1 %v522_v16  ;;  %v462_v2 = vmax.f32 %v398_v56, 0.0  ;;  %v430_v3 = vadd.f32 %v1265_v9, %v359_v57  ;;  %1105 = vmatprep.mubr.bf16.mxu0 %v507_v22  ;;  %v399_v8 = vadd.f32 %v1265_v9, %v328_v63  ;;  %v360_v10 = vmul.f32 %v1258_v6, %v289_v58  ;;  %v292_v16 = vld [vmem:[%s1248_s30 + $0x1f8] sm:$0xff] }
  0x40   : > { %1137 = vmatprep.mubr.bf16.mxu1 %v523_v27  ;;  %v493_v7 = vmax.f32 %v429_v62, 0.0  ;;  %v361_v11 = vmul.f32 %v1258_v6, %v290_v59  ;;  %v400_v14 = vadd.f32 %v1265_v9, %v329_v4  ;;  %v330_v15 = vmul.f32 %v1258_v6, %v259_v0 }
  0x41   : > { %v512_v12 = vpack.c.bf16 %v462_v2, %v461_v61  ;;  %v494_v13 = vmax.f32 %v430_v3, 0.0  ;;  %v463_v17 = vmax.f32 %v399_v8, 0.0  ;;  %v431_v18 = vadd.f32 %v1265_v9, %v360_v10 }
  0x42   : > { %v432_v19 = vadd.f32 %v1265_v9, %v361_v11  ;;  %v331_v20 = vmul.f32 %v1258_v6, %v260_v5  ;;  %v464_v22 = vmax.f32 %v400_v14, 0.0  ;;  %v401_v24 = vadd.f32 %v1265_v9, %v330_v15 }
  0x43   : > { %v528_v21 = vpack.c.bf16 %v494_v13, %v493_v7  ;;  %v362_v25 = vmul.f32 %v1258_v6, %v291_v42  ;;  %v495_v26 = vmax.f32 %v431_v18, 0.0  ;;  %v363_v29 = vmul.f32 %v1258_v6, %v292_v16 }
  0x44   : > { %v496_v27 = vmax.f32 %v432_v19, 0.0  ;;  %v402_v28 = vadd.f32 %v1265_v9, %v331_v20  ;;  %v458_v31 = vmax.f32 %v1445_v40, 0.0  ;;  %v513_v32 = vpack.c.bf16 %v464_v22, %v463_v17 }
  0x45   : > { %v465_v30 = vmax.f32 %v401_v24, 0.0  ;;  %v433_v35 = vadd.f32 %v1265_v9, %v362_v25  ;;  %v489_v39 = vmax.f32 %v1452_v47, 0.0  ;;  %v434_v44 = vadd.f32 %v1265_v9, %v363_v29 }
  0x46   : > { %v529_v37 = vpack.c.bf16 %v496_v27, %v495_v26  ;;  %v466_v43 = vmax.f32 %v402_v28, 0.0  ;;  %1106 = vmatmul.mubr.bf16.gmra.mrb[16].mxu0 %v1435_v33  ;;  %v490_v45 = vmax.f32 %v1458_v52, 0.0  ;;  %v459_v6 = vmax.f32 %v1464_v55, 0.0 }
  0x47   : > { %1138 = vmatmul.mubr.bf16.gmra.mrb[16].mxu1 %v1437_v34  ;;  %v460_v40 = vmax.f32 %v1467_v41, 0.0  ;;  %v497_v48 = vmax.f32 %v433_v35, 0.0  ;;  %1109 = vmatprep.mubr.bf16.mxu0 %v1442_v38  ;;  %v491_v49 = vmax.f32 %v427_v60, 0.0  ;;  %v492_v47 = vmax.f32 %v428_v1, 0.0  ;;  %v1511_v38 = vld [vmem:[%s1655_s4] ss:$0 sm:$0xff] }
  0x48   : > { %1141 = vmatprep.mubr.bf16.mxu1 %v525_v51  ;;  %v514_v50 = vpack.c.bf16 %v466_v43, %v465_v30  ;;  %v498_v53 = vmax.f32 %v434_v44, 0.0  ;;  %v510_v9 = vpack.c.bf16 %v458_v31, %v457_v46  ;;  %v526_v33 = vpack.c.bf16 %v490_v45, %v489_v39 }
  0x49   : > { %v511_v34 = vpack.c.bf16 %v460_v40, %v459_v6  ;;  %v527_v52 = vpack.c.bf16 %v492_v47, %v491_v49 }
  0x4a   : > { %v530_v54 = vpack.c.bf16 %v498_v53, %v497_v48 }
  0x4e   : > { %1110 = vmatmul.mubr.bf16.gmra.mrb[20].mxu0 %v510_v9 }
  0x4f   : > { %1142 = vmatmul.mubr.bf16.gmra.mrb[20].mxu1 %v526_v33  ;;  %1113 = vmatprep.mubr.bf16.mxu0 %v511_v34 }
  0x50   : > { %1145 = vmatprep.mubr.bf16.mxu1 %v527_v52 }
  0x56   : > { %1114 = vmatmul.mubr.bf16.gmra.mrb[24].mxu0 %v512_v12 }
  0x57   : > { %1146 = vmatmul.mubr.bf16.gmra.mrb[24].mxu1 %v528_v21  ;;  %1117 = vmatprep.mubr.bf16.mxu0 %v513_v32 }
  0x58   : > { %1149 = vmatprep.mubr.bf16.mxu1 %v529_v37 }
  0x5e   : > { %1118 = vmatmul.mubr.bf16.gmra.mrb[28].mxu0 %v514_v50 }
  0x5f   : > { %1150 = vmatmul.mubr.bf16.gmra.mrb[28].mxu1 %v530_v54 }
  0xf9   : > { %v1091_v23 = vpop.f32.mrb[0].mxu0 }
  0xfa   : > { %v1123_v46 = vpop.f32.mrb[0].mxu1  ;;  %v645_v51 = vadd.f32 %v1091_v23, %v1511_v38  ;;  %v636_v55 = vpop.f32.mrb[1].mxu0 }
  0xfb   : > { %v773_v36 = vadd.f32 %v1123_v46, %v1511_v38  ;;  %v764_v41 = vpop.f32.mrb[1].mxu1  ;;  %v637_v56 = vadd.f32 %v1511_v38, %v636_v55  ;;  %v1092_v58 = vpop.f32.mrb[2].mxu0 }
  0xfc   : > { %v765_v57 = vadd.f32 %v1511_v38, %v764_v41  ;;  %v1124_v59 = vpop.f32.mrb[2].mxu1  ;;  %893 = vst [vmem:[%s1518_s26 + $0x10] sm:$0xff] %v645_v51  ;;  %v648_v60 = vadd.f32 %v1092_v58, %v1511_v38  ;;  %v639_v62 = vpop.f32.mrb[3].mxu0 }
  0xfd   : > { %925 = vst [vmem:[%s1518_s26 + $0x110] sm:$0xff] %v773_v36  ;;  %v776_v61 = vadd.f32 %v1124_v59, %v1511_v38  ;;  %v767_v63 = vpop.f32.mrb[3].mxu1  ;;  %891 = vst [vmem:[%s1518_s26] sm:$0xff] %v637_v56  ;;  %v640_v0 = vadd.f32 %v1511_v38, %v639_v62 }
  0xfe   : > { %923 = vst [vmem:[%s1518_s26 + $0x100] sm:$0xff] %v765_v57  ;;  %v768_v1 = vadd.f32 %v1511_v38, %v767_v63  ;;  %894 = vst [vmem:[%s1518_s26 + $0x18] sm:$0xff] %v648_v60 }
  0xff   : > { %926 = vst [vmem:[%s1518_s26 + $0x118] sm:$0xff] %v776_v61  ;;  %892 = vst [vmem:[%s1518_s26 + $0x8] sm:$0xff] %v640_v0 }
 0x100   : > { %924 = vst [vmem:[%s1518_s26 + $0x108] sm:$0xff] %v768_v1 }
 0x101   : > { %v1095_v2 = vpop.f32.mrb[4].mxu0 }
 0x102   : > { %v1127_v3 = vpop.f32.mrb[4].mxu1  ;;  %v661_v4 = vadd.f32 %v1095_v2, %v1511_v38  ;;  %v652_v7 = vpop.f32.mrb[5].mxu0 }
 0x103   : > { %v789_v5 = vadd.f32 %v1127_v3, %v1511_v38  ;;  %v780_v8 = vpop.f32.mrb[5].mxu1  ;;  %v653_v10 = vadd.f32 %v1511_v38, %v652_v7  ;;  %v1096_v42 = vpop.f32.mrb[6].mxu0 }
 0x104   : > { %v781_v11 = vadd.f32 %v1511_v38, %v780_v8  ;;  %v1128_v12 = vpop.f32.mrb[6].mxu1  ;;  %897 = vst [vmem:[%s1518_s26 + $0x30] sm:$0xff] %v661_v4  ;;  %v664_v13 = vadd.f32 %v1096_v42, %v1511_v38  ;;  %v655_v15 = vpop.f32.mrb[7].mxu0 }
 0x105   : > { %929 = vst [vmem:[%s1518_s26 + $0x130] sm:$0xff] %v789_v5  ;;  %v792_v14 = vadd.f32 %v1128_v12, %v1511_v38  ;;  %v783_v16 = vpop.f32.mrb[7].mxu1  ;;  %895 = vst [vmem:[%s1518_s26 + $0x20] sm:$0xff] %v653_v10  ;;  %v656_v17 = vadd.f32 %v1511_v38, %v655_v15 }
 0x106   : > { %927 = vst [vmem:[%s1518_s26 + $0x120] sm:$0xff] %v781_v11  ;;  %v784_v18 = vadd.f32 %v1511_v38, %v783_v16  ;;  %898 = vst [vmem:[%s1518_s26 + $0x38] sm:$0xff] %v664_v13 }
 0x107   : > { %930 = vst [vmem:[%s1518_s26 + $0x138] sm:$0xff] %v792_v14  ;;  %896 = vst [vmem:[%s1518_s26 + $0x28] sm:$0xff] %v656_v17 }
 0x108   : > { %928 = vst [vmem:[%s1518_s26 + $0x128] sm:$0xff] %v784_v18 }
 0x109   : > { %v1099_v19 = vpop.f32.mrb[8].mxu0 }
 0x10a   : > { %v1131_v20 = vpop.f32.mrb[8].mxu1  ;;  %v677_v21 = vadd.f32 %v1099_v19, %v1511_v38  ;;  %v668_v24 = vpop.f32.mrb[9].mxu0 }
 0x10b   : > { %v805_v22 = vadd.f32 %v1131_v20, %v1511_v38  ;;  %v796_v25 = vpop.f32.mrb[9].mxu1  ;;  %v669_v26 = vadd.f32 %v1511_v38, %v668_v24  ;;  %v1100_v28 = vpop.f32.mrb[10].mxu0 }
 0x10c   : > { %v797_v27 = vadd.f32 %v1511_v38, %v796_v25  ;;  %v1132_v29 = vpop.f32.mrb[10].mxu1  ;;  %901 = vst [vmem:[%s1518_s26 + $0x50] sm:$0xff] %v677_v21  ;;  %v680_v31 = vadd.f32 %v1100_v28, %v1511_v38  ;;  %v671_v30 = vpop.f32.mrb[11].mxu0 }
 0x10d   : > { %933 = vst [vmem:[%s1518_s26 + $0x150] sm:$0xff] %v805_v22  ;;  %v808_v32 = vadd.f32 %v1132_v29, %v1511_v38  ;;  %v799_v35 = vpop.f32.mrb[11].mxu1  ;;  %899 = vst [vmem:[%s1518_s26 + $0x40] sm:$0xff] %v669_v26  ;;  %v672_v39 = vadd.f32 %v1511_v38, %v671_v30 }
 0x10e   : > { %931 = vst [vmem:[%s1518_s26 + $0x140] sm:$0xff] %v797_v27  ;;  %v800_v37 = vadd.f32 %v1511_v38, %v799_v35  ;;  %902 = vst [vmem:[%s1518_s26 + $0x58] sm:$0xff] %v680_v31 }
 0x10f   : > { %934 = vst [vmem:[%s1518_s26 + $0x158] sm:$0xff] %v808_v32  ;;  %900 = vst [vmem:[%s1518_s26 + $0x48] sm:$0xff] %v672_v39 }
 0x110   : > { %932 = vst [vmem:[%s1518_s26 + $0x148] sm:$0xff] %v800_v37 }
 0x111   : > { %v1103_v43 = vpop.f32.mrb[12].mxu0 }
 0x112   : > { %v1135_v44 = vpop.f32.mrb[12].mxu1  ;;  %v693_v45 = vadd.f32 %v1103_v43, %v1511_v38  ;;  %v684_v40 = vpop.f32.mrb[13].mxu0 }
 0x113   : > { %v821_v6 = vadd.f32 %v1135_v44, %v1511_v38  ;;  %v812_v48 = vpop.f32.mrb[13].mxu1  ;;  %v685_v49 = vadd.f32 %v1511_v38, %v684_v40  ;;  %v1104_v50 = vpop.f32.mrb[14].mxu0 }
 0x114   : > { %v813_v47 = vadd.f32 %v1511_v38, %v812_v48  ;;  %v1136_v53 = vpop.f32.mrb[14].mxu1  ;;  %905 = vst [vmem:[%s1518_s26 + $0x70] sm:$0xff] %v693_v45  ;;  %v696_v54 = vadd.f32 %v1104_v50, %v1511_v38  ;;  %v687_v33 = vpop.f32.mrb[15].mxu0 }
 0x115   : > { %937 = vst [vmem:[%s1518_s26 + $0x170] sm:$0xff] %v821_v6  ;;  %v824_v9 = vadd.f32 %v1136_v53, %v1511_v38  ;;  %v815_v34 = vpop.f32.mrb[15].mxu1  ;;  %903 = vst [vmem:[%s1518_s26 + $0x60] sm:$0xff] %v685_v49  ;;  %v688_v52 = vadd.f32 %v1511_v38, %v687_v33 }
 0x116   : > { %935 = vst [vmem:[%s1518_s26 + $0x160] sm:$0xff] %v813_v47  ;;  %v816_v23 = vadd.f32 %v1511_v38, %v815_v34  ;;  %906 = vst [vmem:[%s1518_s26 + $0x78] sm:$0xff] %v696_v54 }
 0x117   : > { %938 = vst [vmem:[%s1518_s26 + $0x178] sm:$0xff] %v824_v9  ;;  %904 = vst [vmem:[%s1518_s26 + $0x68] sm:$0xff] %v688_v52 }
 0x118   : > { %936 = vst [vmem:[%s1518_s26 + $0x168] sm:$0xff] %v816_v23 }
 0x119   : > { %v1107_v46 = vpop.f32.mrb[16].mxu0 }
 0x11a   : > { %v1139_v51 = vpop.f32.mrb[16].mxu1  ;;  %v709_v36 = vadd.f32 %v1107_v46, %v1511_v38  ;;  %v700_v41 = vpop.f32.mrb[17].mxu0 }
 0x11b   : > { %v837_v55 = vadd.f32 %v1139_v51, %v1511_v38  ;;  %v828_v56 = vpop.f32.mrb[17].mxu1  ;;  %v701_v57 = vadd.f32 %v1511_v38, %v700_v41  ;;  %v1108_v59 = vpop.f32.mrb[18].mxu0 }
 0x11c   : > { %v829_v58 = vadd.f32 %v1511_v38, %v828_v56  ;;  %v1140_v60 = vpop.f32.mrb[18].mxu1  ;;  %909 = vst [vmem:[%s1518_s26 + $0x90] sm:$0xff] %v709_v36  ;;  %v712_v61 = vadd.f32 %v1108_v59, %v1511_v38  ;;  %v703_v63 = vpop.f32.mrb[19].mxu0 }
 0x11d   : > { %941 = vst [vmem:[%s1518_s26 + $0x190] sm:$0xff] %v837_v55  ;;  %v840_v62 = vadd.f32 %v1140_v60, %v1511_v38  ;;  %v831_v0 = vpop.f32.mrb[19].mxu1  ;;  %907 = vst [vmem:[%s1518_s26 + $0x80] sm:$0xff] %v701_v57  ;;  %v704_v1 = vadd.f32 %v1511_v38, %v703_v63 }
 0x11e   : > { %939 = vst [vmem:[%s1518_s26 + $0x180] sm:$0xff] %v829_v58  ;;  %v832_v2 = vadd.f32 %v1511_v38, %v831_v0  ;;  %910 = vst [vmem:[%s1518_s26 + $0x98] sm:$0xff] %v712_v61 }
 0x11f   : > { %942 = vst [vmem:[%s1518_s26 + $0x198] sm:$0xff] %v840_v62  ;;  %908 = vst [vmem:[%s1518_s26 + $0x88] sm:$0xff] %v704_v1 }
 0x120   : > { %940 = vst [vmem:[%s1518_s26 + $0x188] sm:$0xff] %v832_v2 }
 0x121   : > { %v1111_v3 = vpop.f32.mrb[20].mxu0 }
 0x122   : > { %v1143_v4 = vpop.f32.mrb[20].mxu1  ;;  %v725_v5 = vadd.f32 %v1111_v3, %v1511_v38  ;;  %v716_v8 = vpop.f32.mrb[21].mxu0 }
 0x123   : > { %v853_v7 = vadd.f32 %v1143_v4, %v1511_v38  ;;  %v844_v10 = vpop.f32.mrb[21].mxu1  ;;  %v717_v11 = vadd.f32 %v1511_v38, %v716_v8  ;;  %v1112_v12 = vpop.f32.mrb[22].mxu0 }
 0x124   : > { %v845_v42 = vadd.f32 %v1511_v38, %v844_v10  ;;  %v1144_v13 = vpop.f32.mrb[22].mxu1  ;;  %913 = vst [vmem:[%s1518_s26 + $0xb0] sm:$0xff] %v725_v5  ;;  %v728_v14 = vadd.f32 %v1112_v12, %v1511_v38  ;;  %v719_v16 = vpop.f32.mrb[23].mxu0 }
 0x125   : > { %945 = vst [vmem:[%s1518_s26 + $0x1b0] sm:$0xff] %v853_v7  ;;  %v856_v15 = vadd.f32 %v1144_v13, %v1511_v38  ;;  %v847_v17 = vpop.f32.mrb[23].mxu1  ;;  %911 = vst [vmem:[%s1518_s26 + $0xa0] sm:$0xff] %v717_v11  ;;  %v720_v18 = vadd.f32 %v1511_v38, %v719_v16 }
 0x126   : > { %943 = vst [vmem:[%s1518_s26 + $0x1a0] sm:$0xff] %v845_v42  ;;  %v848_v19 = vadd.f32 %v1511_v38, %v847_v17  ;;  %914 = vst [vmem:[%s1518_s26 + $0xb8] sm:$0xff] %v728_v14 }
 0x127   : > { %946 = vst [vmem:[%s1518_s26 + $0x1b8] sm:$0xff] %v856_v15  ;;  %912 = vst [vmem:[%s1518_s26 + $0xa8] sm:$0xff] %v720_v18 }
 0x128   : > { %944 = vst [vmem:[%s1518_s26 + $0x1a8] sm:$0xff] %v848_v19 }
 0x129   : > { %v1115_v20 = vpop.f32.mrb[24].mxu0 }
 0x12a   : > { %v1147_v21 = vpop.f32.mrb[24].mxu1  ;;  %v741_v22 = vadd.f32 %v1115_v20, %v1511_v38  ;;  %v732_v25 = vpop.f32.mrb[25].mxu0 }
 0x12b   : > { %v869_v24 = vadd.f32 %v1147_v21, %v1511_v38  ;;  %v860_v26 = vpop.f32.mrb[25].mxu1  ;;  %v733_v27 = vadd.f32 %v1511_v38, %v732_v25  ;;  %v1116_v29 = vpop.f32.mrb[26].mxu0 }
 0x12c   : > { %v861_v28 = vadd.f32 %v1511_v38, %v860_v26  ;;  %v1148_v31 = vpop.f32.mrb[26].mxu1  ;;  %917 = vst [vmem:[%s1518_s26 + $0xd0] sm:$0xff] %v741_v22  ;;  %v744_v32 = vadd.f32 %v1116_v29, %v1511_v38  ;;  %v735_v35 = vpop.f32.mrb[27].mxu0 }
 0x12d   : > { %949 = vst [vmem:[%s1518_s26 + $0x1d0] sm:$0xff] %v869_v24  ;;  %v872_v30 = vadd.f32 %v1148_v31, %v1511_v38  ;;  %v863_v39 = vpop.f32.mrb[27].mxu1  ;;  %915 = vst [vmem:[%s1518_s26 + $0xc0] sm:$0xff] %v733_v27  ;;  %v736_v37 = vadd.f32 %v1511_v38, %v735_v35 }
 0x12e   : > { %947 = vst [vmem:[%s1518_s26 + $0x1c0] sm:$0xff] %v861_v28  ;;  %v864_v43 = vadd.f32 %v1511_v38, %v863_v39  ;;  %918 = vst [vmem:[%s1518_s26 + $0xd8] sm:$0xff] %v744_v32 }
 0x12f   : > { %950 = vst [vmem:[%s1518_s26 + $0x1d8] sm:$0xff] %v872_v30  ;;  %916 = vst [vmem:[%s1518_s26 + $0xc8] sm:$0xff] %v736_v37 }
 0x130   : > { %948 = vst [vmem:[%s1518_s26 + $0x1c8] sm:$0xff] %v864_v43 }
 0x131   : > { %v1119_v44 = vpop.f32.mrb[28].mxu0 }
 0x132   : > { %v1151_v45 = vpop.f32.mrb[28].mxu1  ;;  %v757_v6 = vadd.f32 %v1119_v44, %v1511_v38  ;;  %v748_v48 = vpop.f32.mrb[29].mxu0 }
 0x133   : > { %v885_v40 = vadd.f32 %v1151_v45, %v1511_v38  ;;  %v876_v49 = vpop.f32.mrb[29].mxu1  ;;  %v749_v47 = vadd.f32 %v1511_v38, %v748_v48  ;;  %v1120_v53 = vpop.f32.mrb[30].mxu0 }
 0x134   : > { %v877_v50 = vadd.f32 %v1511_v38, %v876_v49  ;;  %v1152_v54 = vpop.f32.mrb[30].mxu1  ;;  %921 = vst [vmem:[%s1518_s26 + $0xf0] sm:$0xff] %v757_v6  ;;  %v760_v9 = vadd.f32 %v1120_v53, %v1511_v38  ;;  %v751_v34 = vpop.f32.mrb[31].mxu0 }
 0x135   : > { %953 = vst [vmem:[%s1518_s26 + $0x1f0] sm:$0xff] %v885_v40  ;;  %v888_v33 = vadd.f32 %v1152_v54, %v1511_v38  ;;  %v879_v52 = vpop.f32.mrb[31].mxu1  ;;  %919 = vst [vmem:[%s1518_s26 + $0xe0] sm:$0xff] %v749_v47  ;;  %v752_v23 = vadd.f32 %v1511_v38, %v751_v34 }
 0x136   : > { %951 = vst [vmem:[%s1518_s26 + $0x1e0] sm:$0xff] %v877_v50  ;;  %v880_v46 = vadd.f32 %v1511_v38, %v879_v52  ;;  %922 = vst [vmem:[%s1518_s26 + $0xf8] sm:$0xff] %v760_v9 }
 0x137   : > { %954 = vst [vmem:[%s1518_s26 + $0x1f8] sm:$0xff] %v888_v33  ;;  %920 = vst [vmem:[%s1518_s26 + $0xe8] sm:$0xff] %v752_v23 }
 0x138   : > { %952 = vst [vmem:[%s1518_s26 + $0x1e8] sm:$0xff] %v880_v46 }
 0x139 PF: > { %s15_s18 = sadd.s32 1, %s1191_s18  }
 0x13a   : > { %p12_p4 = scmp.ge.s32.totalorder %s15_s18, 4  }
 0x13c   :  { %14 = sbr.rel (!%p12_p4) target bundleno = 1 (0x1), region = 70 }

// kernel: mlp_forward.3
= control target key start
LH: loop header
LB: loop body
LE: loop exit
PB: predicated region body
PF: predicated region fallthrough
CT: control target
= control target key end

     0   :  { %s1386_s12 = smov 0   ;;  %s1928_s0 = inlined_call_operand.vmem [shape: bf16[1024,128], index: 0, kind: input, shape index: {}]   ;;  %s1929_s1 = inlined_call_operand.vmem [shape: bf16[128,128], index: 1, kind: input, shape index: {}]   ;;  %s1930_s2 = inlined_call_operand.vmem [shape: f32[1024,128], index: 2, kind: output, shape index: {0}]   ;;  %s1931_s3 = inlined_call_operand.vmem [shape: f32[2,128], index: 3, kind: output, shape index: {1}]  }
   0x1 LB: > { %s1120_s13 = sadd.s32 4294967295, %s1363_s12   ;;  %p1124_p0 = scmp.ge.s32.totalorder %s1363_s12, 1  ;;  %s1363_s12 = sphi %s1386_s12, %s14_s12  }
   0x2   : > { %p136_p1 = scmp.lt.s32.totalorder %s1363_s12, 3 }
   0x4   : > { %p137_p2 = pnand %p1124_p0, %p136_p1 }
   0x6   : > { %140 = sbr.rel (%p137_p2) target bundleno = 475 (0x1db), region = 28 }
   0xd   : > { %v1317_v0 = vld [vmem:[%s1929_s1] sm:$0xff]   ;;  %s1125_s16 = sshll.u32 %s1120_s13, 6  ;;  %v1318_v1 = vld [vmem:[%s1929_s1 + $0x8] sm:$0xff]   ;;  %v1319_v2 = vld [vmem:[%s1929_s1 + $0x10] sm:$0xff]   ;;  %p1169_p4 = scmp.ne.s32.totalorder %s1120_s13, 0 }
   0xe   : > { %p161_p3 = scmp.lt.s32.totalorder %s1125_s16, 127  ;;  %1212 = vmatprep.subr.bf16.mxu0 %v1317_v0  ;;  %1292 = vmatprep.subr.bf16.mxu1 %v1317_v0  ;;  %v1320_v3 = vld [vmem:[%s1929_s1 + $0x18] sm:$0xff]   ;;  %v1321_v6 = vld [vmem:[%s1929_s1 + $0x20] sm:$0xff]   ;;  %v1322_v7 = vld [vmem:[%s1929_s1 + $0x28] sm:$0xff]  }
   0xf   : > { %1213 = vmatpush3.bf16.msra.mxu0 %v1317_v0  ;;  %1300 = vmatpush3.bf16.msra.mxu1 %v1317_v0  ;;  %v1323_v8 = vld [vmem:[%s1929_s1 + $0x30] sm:$0xff]   ;;  %v1324_v9 = vld [vmem:[%s1929_s1 + $0x38] sm:$0xff]  }
  0x10   : > { %s1981_s16 = smov (!%p161_p3, %s1125_s16), 127  ;;  %1214 = vmatprep.subr.bf16.mxu0 %v1318_v1  ;;  %1293 = vmatprep.subr.bf16.mxu1 %v1318_v1 }
  0x11   : > { %s1126_s21 = sshll.u32 %s1981_s16, 2  ;;  %s1128_s8 = sshll.u32 %s1981_s16, 3 }
  0x12   : > { %s1411_s24 = scalar_lea.vmem %s1928_s0, %s1126_s21  ;;  %s1464_s11 = scalar_lea.vmem %s1930_s2, %s1128_s8 }
  0x13   : > { %1215 = vmatpush3.bf16.msra.mxu0 %v1318_v1  ;;  %1301 = vmatpush3.bf16.msra.mxu1 %v1318_v1  ;;  %v1325_v4 = vld [vmem:[%s1411_s24] sm:$0xff]   ;;  %v1327_v10 = vld [vmem:[%s1411_s24 + $0x8] sm:$0xff]   ;;  %v1329_v12 = vld [vmem:[%s1411_s24 + $0x10] sm:$0xff]  }
  0x14   : > { %1216 = vmatprep.subr.bf16.mxu0 %v1319_v2  ;;  %1294 = vmatprep.subr.bf16.mxu1 %v1319_v2  ;;  %v1326_v5 = vld [vmem:[%s1411_s24 + $0x80] sm:$0xff]   ;;  %v1328_v11 = vld [vmem:[%s1411_s24 + $0x88] sm:$0xff]   ;;  %v1330_v13 = vld [vmem:[%s1411_s24 + $0x90] sm:$0xff]  }
  0x15   : > { %1228 = vmatprep.mubr.bf16.mxu0 %v1325_v4  ;;  %1260 = vmatprep.mubr.bf16.mxu1 %v1326_v5  ;;  %v1331_v14 = vld [vmem:[%s1411_s24 + $0x18] sm:$0xff]   ;;  %v1333_v16 = vld [vmem:[%s1411_s24 + $0x20] sm:$0xff]   ;;  %v1335_v18 = vld [vmem:[%s1411_s24 + $0x28] sm:$0xff]  }
  0x16   : > { %v1332_v15 = vld [vmem:[%s1411_s24 + $0x98] sm:$0xff]   ;;  %v1334_v17 = vld [vmem:[%s1411_s24 + $0xa0] sm:$0xff]   ;;  %v1336_v19 = vld [vmem:[%s1411_s24 + $0xa8] sm:$0xff]  }
  0x17   : > { %1217 = vmatpush3.bf16.msra.mxu0 %v1319_v2  ;;  %1302 = vmatpush3.bf16.msra.mxu1 %v1319_v2  ;;  %v1337_v20 = vld [vmem:[%s1411_s24 + $0x30] sm:$0xff]   ;;  %v1339_v22 = vld [vmem:[%s1411_s24 + $0x38] sm:$0xff]   ;;  %v1341_v24 = vld [vmem:[%s1411_s24 + $0x40] sm:$0xff]  }
  0x18   : > { %1218 = vmatprep.subr.bf16.mxu0 %v1320_v3  ;;  %1295 = vmatprep.subr.bf16.mxu1 %v1320_v3  ;;  %v1338_v21 = vld [vmem:[%s1411_s24 + $0xb0] sm:$0xff]   ;;  %v1340_v23 = vld [vmem:[%s1411_s24 + $0xb8] sm:$0xff]   ;;  %v1342_v25 = vld [vmem:[%s1411_s24 + $0xc0] sm:$0xff]  }
  0x19   : > { %v1343_v26 = vld [vmem:[%s1411_s24 + $0x48] sm:$0xff]   ;;  %v1345_v28 = vld [vmem:[%s1411_s24 + $0x50] sm:$0xff]   ;;  %v1347_v30 = vld [vmem:[%s1411_s24 + $0x58] sm:$0xff]  }
  0x1a   : > { %v1344_v27 = vld [vmem:[%s1411_s24 + $0xc8] sm:$0xff]   ;;  %v1346_v29 = vld [vmem:[%s1411_s24 + $0xd0] sm:$0xff]   ;;  %v1348_v31 = vld [vmem:[%s1411_s24 + $0xd8] sm:$0xff]  }
  0x1b   : > { %1219 = vmatpush3.bf16.msra.mxu0 %v1320_v3  ;;  %1303 = vmatpush3.bf16.msra.mxu1 %v1320_v3  ;;  %v1349_v32 = vld [vmem:[%s1411_s24 + $0x60] sm:$0xff]   ;;  %v1351_v34 = vld [vmem:[%s1411_s24 + $0x68] sm:$0xff]   ;;  %v1353_v36 = vld [vmem:[%s1411_s24 + $0x70] sm:$0xff]  }
  0x1c   : > { %1220 = vmatprep.subr.bf16.mxu0 %v1321_v6  ;;  %1296 = vmatprep.subr.bf16.mxu1 %v1321_v6  ;;  %v1350_v33 = vld [vmem:[%s1411_s24 + $0xe0] sm:$0xff]   ;;  %v1352_v35 = vld [vmem:[%s1411_s24 + $0xe8] sm:$0xff]   ;;  %v1354_v37 = vld [vmem:[%s1411_s24 + $0xf0] sm:$0xff]  }
  0x1d   : > { %v1355_v38 = vld [vmem:[%s1411_s24 + $0x78] sm:$0xff]  }
  0x1e   : > { %v1356_v39 = vld [vmem:[%s1411_s24 + $0xf8] sm:$0xff]  }
  0x1f   : > { %1221 = vmatpush3.bf16.msra.mxu0 %v1321_v6  ;;  %1304 = vmatpush3.bf16.msra.mxu1 %v1321_v6 }
  0x20   : > { %1222 = vmatprep.subr.bf16.mxu0 %v1322_v7  ;;  %1297 = vmatprep.subr.bf16.mxu1 %v1322_v7 }
  0x23   : > { %1223 = vmatpush3.bf16.msra.mxu0 %v1322_v7  ;;  %1305 = vmatpush3.bf16.msra.mxu1 %v1322_v7 }
  0x24   : > { %1224 = vmatprep.subr.bf16.mxu0 %v1323_v8  ;;  %1298 = vmatprep.subr.bf16.mxu1 %v1323_v8 }
  0x27   : > { %1225 = vmatpush3.bf16.msra.mxu0 %v1323_v8  ;;  %1306 = vmatpush3.bf16.msra.mxu1 %v1323_v8 }
  0x28   : > { %1226 = vmatprep.subr.bf16.mxu0 %v1324_v9  ;;  %1299 = vmatprep.subr.bf16.mxu1 %v1324_v9 }
  0x2b   : > { %1227 = vmatpush3.bf16.msra.mxu0 %v1324_v9  ;;  %1307 = vmatpush3.bf16.msra.mxu1 %v1324_v9 }
  0x2e   : > { %1229 = vmatmul.mubr.bf16.vlgmr.msra.gmra.mrb[0].mxu0 %v1327_v10  ;;  %1261 = vmatmul.mubr.bf16.vlgmr.msra.gmra.mrb[0].mxu1 %v1328_v11 }
  0x2f   : > { %1232 = vmatprep.mubr.bf16.mxu0 %v1329_v12  ;;  %1264 = vmatprep.mubr.bf16.mxu1 %v1330_v13 }
  0x36   : > { %1233 = vmatmul.mubr.bf16.gmra.mrb[4].mxu0 %v1331_v14  ;;  %1265 = vmatmul.mubr.bf16.gmra.mrb[4].mxu1 %v1332_v15 }
  0x37   : > { %1236 = vmatprep.mubr.bf16.mxu0 %v1333_v16  ;;  %1268 = vmatprep.mubr.bf16.mxu1 %v1334_v17 }
  0x3e   : > { %1237 = vmatmul.mubr.bf16.gmra.mrb[8].mxu0 %v1335_v18  ;;  %1269 = vmatmul.mubr.bf16.gmra.mrb[8].mxu1 %v1336_v19 }
  0x3f   : > { %1240 = vmatprep.mubr.bf16.mxu0 %v1337_v20  ;;  %1272 = vmatprep.mubr.bf16.mxu1 %v1338_v21 }
  0x46   : > { %1241 = vmatmul.mubr.bf16.gmra.mrb[12].mxu0 %v1339_v22  ;;  %1273 = vmatmul.mubr.bf16.gmra.mrb[12].mxu1 %v1340_v23 }
  0x47   : > { %1244 = vmatprep.mubr.bf16.mxu0 %v1341_v24  ;;  %1276 = vmatprep.mubr.bf16.mxu1 %v1342_v25 }
  0x4e   : > { %1245 = vmatmul.mubr.bf16.gmra.mrb[16].mxu0 %v1343_v26  ;;  %1277 = vmatmul.mubr.bf16.gmra.mrb[16].mxu1 %v1344_v27 }
  0x4f   : > { %1248 = vmatprep.mubr.bf16.mxu0 %v1345_v28  ;;  %1280 = vmatprep.mubr.bf16.mxu1 %v1346_v29 }
  0x56   : > { %1249 = vmatmul.mubr.bf16.gmra.mrb[20].mxu0 %v1347_v30  ;;  %1281 = vmatmul.mubr.bf16.gmra.mrb[20].mxu1 %v1348_v31 }
  0x57   : > { %1252 = vmatprep.mubr.bf16.mxu0 %v1349_v32  ;;  %1284 = vmatprep.mubr.bf16.mxu1 %v1350_v33 }
  0x5e   : > { %1253 = vmatmul.mubr.bf16.gmra.mrb[24].mxu0 %v1351_v34  ;;  %1285 = vmatmul.mubr.bf16.gmra.mrb[24].mxu1 %v1352_v35 }
  0x5f   : > { %1256 = vmatprep.mubr.bf16.mxu0 %v1353_v36  ;;  %1288 = vmatprep.mubr.bf16.mxu1 %v1354_v37 }
  0x66   : > { %1257 = vmatmul.mubr.bf16.gmra.mrb[28].mxu0 %v1355_v38  ;;  %1289 = vmatmul.mubr.bf16.gmra.mrb[28].mxu1 %v1356_v39 }
 0x101   : > { %v1466_v40 = vpop.f32.mrb[0].mxu0  ;;  %v1468_v41 = vpop.f32.mrb[0].mxu1 }
 0x102   : > { %784 = vst [vmem:[%s1464_s11 + $0x10] sm:$0xff] %v1466_v40  ;;  %816 = vst [vmem:[%s1464_s11 + $0x110] sm:$0xff] %v1468_v41  ;;  %v1474_v42 = vpop.f32.mrb[1].mxu0  ;;  %v1476_v43 = vpop.f32.mrb[1].mxu1 }
 0x103   : > { %782 = vst [vmem:[%s1464_s11] sm:$0xff] %v1474_v42  ;;  %814 = vst [vmem:[%s1464_s11 + $0x100] sm:$0xff] %v1476_v43  ;;  %v1482_v44 = vpop.f32.mrb[2].mxu0  ;;  %v1484_v45 = vpop.f32.mrb[2].mxu1 }
 0x104   : > { %785 = vst [vmem:[%s1464_s11 + $0x18] sm:$0xff] %v1482_v44  ;;  %817 = vst [vmem:[%s1464_s11 + $0x118] sm:$0xff] %v1484_v45  ;;  %v1490_v46 = vpop.f32.mrb[3].mxu0  ;;  %v1492_v47 = vpop.f32.mrb[3].mxu1 }
 0x105   : > { %783 = vst [vmem:[%s1464_s11 + $0x8] sm:$0xff] %v1490_v46  ;;  %815 = vst [vmem:[%s1464_s11 + $0x108] sm:$0xff] %v1492_v47 }
 0x109   : > { %v1498_v48 = vpop.f32.mrb[4].mxu0  ;;  %v1500_v49 = vpop.f32.mrb[4].mxu1 }
 0x10a   : > { %788 = vst [vmem:[%s1464_s11 + $0x30] sm:$0xff] %v1498_v48  ;;  %820 = vst [vmem:[%s1464_s11 + $0x130] sm:$0xff] %v1500_v49  ;;  %v1506_v50 = vpop.f32.mrb[5].mxu0  ;;  %v1508_v51 = vpop.f32.mrb[5].mxu1 }
 0x10b   : > { %786 = vst [vmem:[%s1464_s11 + $0x20] sm:$0xff] %v1506_v50  ;;  %818 = vst [vmem:[%s1464_s11 + $0x120] sm:$0xff] %v1508_v51  ;;  %v1514_v52 = vpop.f32.mrb[6].mxu0  ;;  %v1516_v53 = vpop.f32.mrb[6].mxu1 }
 0x10c   : > { %789 = vst [vmem:[%s1464_s11 + $0x38] sm:$0xff] %v1514_v52  ;;  %821 = vst [vmem:[%s1464_s11 + $0x138] sm:$0xff] %v1516_v53  ;;  %v1522_v54 = vpop.f32.mrb[7].mxu0  ;;  %v1524_v55 = vpop.f32.mrb[7].mxu1 }
 0x10d   : > { %787 = vst [vmem:[%s1464_s11 + $0x28] sm:$0xff] %v1522_v54  ;;  %819 = vst [vmem:[%s1464_s11 + $0x128] sm:$0xff] %v1524_v55 }
 0x111   : > { %v1530_v56 = vpop.f32.mrb[8].mxu0  ;;  %v1532_v57 = vpop.f32.mrb[8].mxu1 }
 0x112   : > { %792 = vst [vmem:[%s1464_s11 + $0x50] sm:$0xff] %v1530_v56  ;;  %824 = vst [vmem:[%s1464_s11 + $0x150] sm:$0xff] %v1532_v57  ;;  %v1538_v58 = vpop.f32.mrb[9].mxu0  ;;  %v1540_v59 = vpop.f32.mrb[9].mxu1 }
 0x113   : > { %790 = vst [vmem:[%s1464_s11 + $0x40] sm:$0xff] %v1538_v58  ;;  %822 = vst [vmem:[%s1464_s11 + $0x140] sm:$0xff] %v1540_v59  ;;  %v1546_v60 = vpop.f32.mrb[10].mxu0  ;;  %v1548_v61 = vpop.f32.mrb[10].mxu1 }
 0x114   : > { %793 = vst [vmem:[%s1464_s11 + $0x58] sm:$0xff] %v1546_v60  ;;  %825 = vst [vmem:[%s1464_s11 + $0x158] sm:$0xff] %v1548_v61  ;;  %v1554_v62 = vpop.f32.mrb[11].mxu0  ;;  %v1556_v63 = vpop.f32.mrb[11].mxu1 }
 0x115   : > { %791 = vst [vmem:[%s1464_s11 + $0x48] sm:$0xff] %v1554_v62  ;;  %823 = vst [vmem:[%s1464_s11 + $0x148] sm:$0xff] %v1556_v63 }
 0x119   : > { %v1562_v0 = vpop.f32.mrb[12].mxu0  ;;  %v1564_v1 = vpop.f32.mrb[12].mxu1 }
 0x11a   : > { %796 = vst [vmem:[%s1464_s11 + $0x70] sm:$0xff] %v1562_v0  ;;  %828 = vst [vmem:[%s1464_s11 + $0x170] sm:$0xff] %v1564_v1  ;;  %v1570_v2 = vpop.f32.mrb[13].mxu0  ;;  %v1572_v3 = vpop.f32.mrb[13].mxu1 }
 0x11b   : > { %794 = vst [vmem:[%s1464_s11 + $0x60] sm:$0xff] %v1570_v2  ;;  %826 = vst [vmem:[%s1464_s11 + $0x160] sm:$0xff] %v1572_v3  ;;  %v1578_v4 = vpop.f32.mrb[14].mxu0  ;;  %v1580_v5 = vpop.f32.mrb[14].mxu1 }
 0x11c   : > { %797 = vst [vmem:[%s1464_s11 + $0x78] sm:$0xff] %v1578_v4  ;;  %829 = vst [vmem:[%s1464_s11 + $0x178] sm:$0xff] %v1580_v5  ;;  %v1586_v6 = vpop.f32.mrb[15].mxu0  ;;  %v1588_v7 = vpop.f32.mrb[15].mxu1 }
 0x11d   : > { %795 = vst [vmem:[%s1464_s11 + $0x68] sm:$0xff] %v1586_v6  ;;  %827 = vst [vmem:[%s1464_s11 + $0x168] sm:$0xff] %v1588_v7 }
 0x121   : > { %v1594_v8 = vpop.f32.mrb[16].mxu0  ;;  %v1596_v9 = vpop.f32.mrb[16].mxu1 }
 0x122   : > { %800 = vst [vmem:[%s1464_s11 + $0x90] sm:$0xff] %v1594_v8  ;;  %832 = vst [vmem:[%s1464_s11 + $0x190] sm:$0xff] %v1596_v9  ;;  %v1602_v10 = vpop.f32.mrb[17].mxu0  ;;  %v1604_v11 = vpop.f32.mrb[17].mxu1 }
 0x123   : > { %798 = vst [vmem:[%s1464_s11 + $0x80] sm:$0xff] %v1602_v10  ;;  %830 = vst [vmem:[%s1464_s11 + $0x180] sm:$0xff] %v1604_v11  ;;  %v1610_v12 = vpop.f32.mrb[18].mxu0  ;;  %v1612_v13 = vpop.f32.mrb[18].mxu1 }
 0x124   : > { %801 = vst [vmem:[%s1464_s11 + $0x98] sm:$0xff] %v1610_v12  ;;  %833 = vst [vmem:[%s1464_s11 + $0x198] sm:$0xff] %v1612_v13  ;;  %v1618_v14 = vpop.f32.mrb[19].mxu0  ;;  %v1620_v15 = vpop.f32.mrb[19].mxu1 }
 0x125   : > { %799 = vst [vmem:[%s1464_s11 + $0x88] sm:$0xff] %v1618_v14  ;;  %831 = vst [vmem:[%s1464_s11 + $0x188] sm:$0xff] %v1620_v15 }
 0x129   : > { %v1626_v16 = vpop.f32.mrb[20].mxu0  ;;  %v1628_v17 = vpop.f32.mrb[20].mxu1 }
 0x12a   : > { %1956 = vst [vmem:[#allocation2_spill] sm:$0xff] %v1628_v17  ;;  %804 = vst [vmem:[%s1464_s11 + $0xb0] sm:$0xff] %v1626_v16  ;;  %v1634_v18 = vpop.f32.mrb[21].mxu0  ;;  %v1636_v19 = vpop.f32.mrb[21].mxu1 }
 0x12b   : > { %836 = vst [vmem:[%s1464_s11 + $0x1b0] sm:$0xff] %v1628_v17  ;;  %1957 = vst [vmem:[#allocation3_spill] sm:$0xff] %v1636_v19  ;;  %v1642_v20 = vpop.f32.mrb[22].mxu0  ;;  %v1644_v21 = vpop.f32.mrb[22].mxu1 }
 0x12c   : > { %802 = vst [vmem:[%s1464_s11 + $0xa0] sm:$0xff] %v1634_v18  ;;  %834 = vst [vmem:[%s1464_s11 + $0x1a0] sm:$0xff] %v1636_v19  ;;  %v1650_v22 = vpop.f32.mrb[23].mxu0  ;;  %v1652_v23 = vpop.f32.mrb[23].mxu1 }
 0x12d   : > { %1958 = vst [vmem:[#allocation4_spill] sm:$0xff] %v1644_v21  ;;  %805 = vst [vmem:[%s1464_s11 + $0xb8] sm:$0xff] %v1642_v20 }
 0x12e   : > { %837 = vst [vmem:[%s1464_s11 + $0x1b8] sm:$0xff] %v1644_v21  ;;  %1959 = vst [vmem:[#allocation5_spill] sm:$0xff] %v1652_v23 }
 0x12f   : > { %803 = vst [vmem:[%s1464_s11 + $0xa8] sm:$0xff] %v1650_v22  ;;  %835 = vst [vmem:[%s1464_s11 + $0x1a8] sm:$0xff] %v1652_v23 }
 0x131   : > { %v1658_v24 = vpop.f32.mrb[24].mxu0  ;;  %v1660_v25 = vpop.f32.mrb[24].mxu1 }
 0x132   : > { %1960 = vst [vmem:[#allocation6_spill] sm:$0xff] %v1660_v25  ;;  %808 = vst [vmem:[%s1464_s11 + $0xd0] sm:$0xff] %v1658_v24  ;;  %v1666_v26 = vpop.f32.mrb[25].mxu0  ;;  %v1668_v27 = vpop.f32.mrb[25].mxu1 }
 0x133   : > { %840 = vst [vmem:[%s1464_s11 + $0x1d0] sm:$0xff] %v1660_v25  ;;  %1961 = vst [vmem:[#allocation7_spill] sm:$0xff] %v1668_v27  ;;  %v1674_v28 = vpop.f32.mrb[26].mxu0  ;;  %v1676_v29 = vpop.f32.mrb[26].mxu1 }
 0x134   : > { %806 = vst [vmem:[%s1464_s11 + $0xc0] sm:$0xff] %v1666_v26  ;;  %838 = vst [vmem:[%s1464_s11 + $0x1c0] sm:$0xff] %v1668_v27  ;;  %v1682_v30 = vpop.f32.mrb[27].mxu0  ;;  %v1684_v31 = vpop.f32.mrb[27].mxu1 }
 0x135   : > { %1962 = vst [vmem:[#allocation8_spill] sm:$0xff] %v1676_v29  ;;  %809 = vst [vmem:[%s1464_s11 + $0xd8] sm:$0xff] %v1674_v28 }
 0x136   : > { %841 = vst [vmem:[%s1464_s11 + $0x1d8] sm:$0xff] %v1676_v29  ;;  %1963 = vst [vmem:[#allocation9_spill] sm:$0xff] %v1684_v31 }
 0x137   : > { %807 = vst [vmem:[%s1464_s11 + $0xc8] sm:$0xff] %v1682_v30  ;;  %839 = vst [vmem:[%s1464_s11 + $0x1c8] sm:$0xff] %v1684_v31 }
 0x139   : > { %v1690_v32 = vpop.f32.mrb[28].mxu0  ;;  %v1692_v33 = vpop.f32.mrb[28].mxu1  ;;  %849 = sbr.rel (%p1169_p4) target bundleno = 321 (0x141), region = 32 }
 0x13a   : > { %1964 = vst [vmem:[#allocation10_spill] sm:$0xff] %v1692_v33  ;;  %812 = vst [vmem:[%s1464_s11 + $0xf0] sm:$0xff] %v1690_v32  ;;  %v1698_v34 = vpop.f32.mrb[29].mxu0  ;;  %v1700_v35 = vpop.f32.mrb[29].mxu1 }
 0x13b   : > { %844 = vst [vmem:[%s1464_s11 + $0x1f0] sm:$0xff] %v1692_v33  ;;  %1965 = vst [vmem:[#allocation11_spill] sm:$0xff] %v1700_v35  ;;  %v1706_v36 = vpop.f32.mrb[30].mxu0  ;;  %v1708_v37 = vpop.f32.mrb[30].mxu1  ;;  %v1365_v33 = vmov (!%p1169_p4), 0.0  }
 0x13c   : > { %810 = vst [vmem:[%s1464_s11 + $0xe0] sm:$0xff] %v1698_v34  ;;  %842 = vst [vmem:[%s1464_s11 + $0x1e0] sm:$0xff] %v1700_v35  ;;  %v1714_v38 = vpop.f32.mrb[31].mxu0  ;;  %v1716_v39 = vpop.f32.mrb[31].mxu1 }
 0x13d   : > { %1966 = vst [vmem:[#allocation12_spill] sm:$0xff] %v1708_v37  ;;  %813 = vst [vmem:[%s1464_s11 + $0xf8] sm:$0xff] %v1706_v36 }
 0x13e   : > { %845 = vst [vmem:[%s1464_s11 + $0x1f8] sm:$0xff] %v1708_v37  ;;  %1967 = vst [vmem:[#allocation13_spill] sm:$0xff] %v1716_v39 }
 0x13f   : > { %811 = vst [vmem:[%s1464_s11 + $0xe8] sm:$0xff] %v1714_v38  ;;  %843 = vst [vmem:[%s1464_s11 + $0x1e8] sm:$0xff] %v1716_v39 }
 0x140   : > { %850 = vst [vmem:[%s1931_s3] sm:$0x3] %v1365_v33 }
 0x141 PF: > { %v851_v37 = vadd.f32 %v1490_v46, %v1474_v42  ;;  %v920_v33 = vmul.f32 %v1474_v42, %v1474_v42  ;;  %v921_v17 = vmul.f32 %v1490_v46, %v1490_v46  ;;  %v925_v46 = vmul.f32 %v1522_v54, %v1522_v54 }
 0x142   : > { %vm1054_vm0 = vcmask 1040384  }
 0x143   : > { %v852_v35 = vadd.f32 %v1466_v40, %v851_v37 }
 0x145   : > { %v853_v29 = vadd.f32 %v1482_v44, %v852_v35  ;;  %v922_v35 = vmul.f32 %v1466_v40, %v1466_v40 }
 0x147   : > { %v854_v25 = vadd.f32 %v853_v29, %v1506_v50 }
 0x149   : > { %v855_v39 = vadd.f32 %v854_v25, %v1522_v54  ;;  %v923_v25 = vmul.f32 %v1482_v44, %v1482_v44 }
 0x14b   : > { %v856_v31 = vadd.f32 %v1498_v48, %v855_v39  ;;  %v984_v39 = vadd.f32 %v921_v17, %v920_v33  ;;  %v927_v17 = vmul.f32 %v1514_v52, %v1514_v52 }
 0x14d   : > { %v857_v27 = vadd.f32 %v1514_v52, %v856_v31  ;;  %v985_v42 = vadd.f32 %v984_v39, %v922_v35  ;;  %v928_v35 = vmul.f32 %v1538_v58, %v1538_v58  ;;  %v930_v39 = vmul.f32 %v1530_v56, %v1530_v56 }
 0x14f   : > { %v858_v21 = vadd.f32 %v857_v27, %v1538_v58  ;;  %v924_v27 = vmul.f32 %v1506_v50, %v1506_v50 }
 0x151   : > { %v859_v37 = vadd.f32 %v858_v21, %v1554_v62  ;;  %v986_v21 = vadd.f32 %v985_v42, %v923_v25  ;;  %v932_v42 = vmul.f32 %v1570_v2, %v1570_v2 }
 0x153   : > { %v860_v29 = vadd.f32 %v1530_v56, %v859_v37  ;;  %v926_v37 = vmul.f32 %v1498_v48, %v1498_v48  ;;  %v987_v19 = vadd.f32 %v986_v21, %v924_v27  ;;  %v933_v21 = vmul.f32 %v1586_v6, %v1586_v6 }
 0x155   : > { %v861_v31 = vadd.f32 %v1546_v60, %v860_v29  ;;  %v988_v33 = vadd.f32 %v987_v19, %v925_v46  ;;  %v931_v19 = vmul.f32 %v1546_v60, %v1546_v60 }
 0x157   : > { %v862_v23 = vadd.f32 %v861_v31, %v1570_v2  ;;  %v989_v29 = vadd.f32 %v988_v33, %v926_v37  ;;  %v934_v37 = vmul.f32 %v1562_v0, %v1562_v0 }
 0x159   : > { %v863_v40 = vadd.f32 %v862_v23, %v1586_v6  ;;  %v929_v23 = vmul.f32 %v1554_v62, %v1554_v62  ;;  %v990_v25 = vadd.f32 %v989_v29, %v927_v17  ;;  %v935_v17 = vmul.f32 %v1578_v4, %v1578_v4 }
 0x15a   : > { %v937_v29 = vmul.f32 %v1618_v14, %v1618_v14 }
 0x15b   : > { %v864_v44 = vadd.f32 %v1562_v0, %v863_v40  ;;  %v991_v31 = vadd.f32 %v990_v25, %v928_v35 }
 0x15d   : > { %v865_v50 = vadd.f32 %v1578_v4, %v864_v44  ;;  %v992_v27 = vadd.f32 %v991_v31, %v929_v23  ;;  %v938_v23 = vmul.f32 %v1594_v8, %v1594_v8  ;;  %v940_v31 = vmul.f32 %v1634_v18, %v1634_v18 }
 0x15f   : > { %v866_v54 = vadd.f32 %v865_v50, %v1602_v10  ;;  %v993_v46 = vadd.f32 %v992_v27, %v930_v39  ;;  %v936_v50 = vmul.f32 %v1602_v10, %v1602_v10 }
 0x161   : > { %v867_v48 = vadd.f32 %v866_v54, %v1618_v14  ;;  %v994_v40 = vadd.f32 %v993_v46, %v931_v19  ;;  %v941_v19 = vmul.f32 %v1650_v22, %v1650_v22  ;;  %v943_v46 = vmul.f32 %v1642_v20, %v1642_v20 }
 0x163   : > { %v868_v52 = vadd.f32 %v1594_v8, %v867_v48  ;;  %v995_v44 = vadd.f32 %v994_v40, %v932_v42  ;;  %v939_v48 = vmul.f32 %v1610_v12, %v1610_v12 }
 0x165   : > { %v869_v58 = vadd.f32 %v1610_v12, %v868_v52  ;;  %v996_v33 = vadd.f32 %v995_v44, %v933_v21  ;;  %v944_v21 = vmul.f32 %v1666_v26, %v1666_v26  ;;  %v946_v44 = vmul.f32 %v1658_v24, %v1658_v24 }
 0x167   : > { %v870_v62 = vadd.f32 %v869_v58, %v1634_v18  ;;  %v997_v35 = vadd.f32 %v996_v33, %v934_v37  ;;  %v942_v58 = vmul.f32 %v1626_v16, %v1626_v16 }
 0x169   : > { %v871_v56 = vadd.f32 %v870_v62, %v1650_v22  ;;  %v998_v54 = vadd.f32 %v997_v35, %v935_v17  ;;  %v947_v17 = vmul.f32 %v1674_v28, %v1674_v28  ;;  %v949_v35 = vmul.f32 %v1714_v38, %v1714_v38 }
 0x16b   : > { %v872_v60 = vadd.f32 %v1626_v16, %v871_v56  ;;  %v999_v25 = vadd.f32 %v998_v54, %v936_v50  ;;  %v945_v56 = vmul.f32 %v1682_v30, %v1682_v30 }
 0x16d   : > { %v873_v2 = vadd.f32 %v1642_v20, %v872_v60  ;;  %v1000_v39 = vadd.f32 %v999_v25, %v937_v29  ;;  %v950_v29 = vmul.f32 %v1690_v32, %v1690_v32  ;;  %v952_v25 = vmul.f32 %v1476_v43, %v1476_v43 }
 0x16f   : > { %v874_v6 = vadd.f32 %v873_v2, %v1666_v26  ;;  %v1001_v52 = vadd.f32 %v1000_v39, %v938_v23  ;;  %v948_v2 = vmul.f32 %v1698_v34, %v1698_v34 }
 0x171   : > { %v875_v0 = vadd.f32 %v874_v6, %v1682_v30  ;;  %v1002_v27 = vadd.f32 %v1001_v52, %v939_v48  ;;  %v953_v48 = vmul.f32 %v1492_v47, %v1492_v47  ;;  %v955_v52 = vmul.f32 %v1484_v45, %v1484_v45 }
 0x173   : > { %v876_v4 = vadd.f32 %v1658_v24, %v875_v0  ;;  %v1003_v42 = vadd.f32 %v1002_v27, %v940_v31  ;;  %v951_v0 = vmul.f32 %v1706_v36, %v1706_v36 }
 0x175   : > { %v877_v10 = vadd.f32 %v1674_v28, %v876_v4  ;;  %v1004_v62 = vadd.f32 %v1003_v42, %v941_v19  ;;  %v956_v19 = vmul.f32 %v1508_v51, %v1508_v51  ;;  %v958_v42 = vmul.f32 %v1500_v49, %v1500_v49 }
 0x177   : > { %v878_v14 = vadd.f32 %v877_v10, %v1698_v34  ;;  %v1005_v40 = vadd.f32 %v1004_v62, %v942_v58  ;;  %v954_v10 = vmul.f32 %v1468_v41, %v1468_v41 }
 0x179   : > { %v879_v8 = vadd.f32 %v878_v14, %v1714_v38  ;;  %v1006_v37 = vadd.f32 %v1005_v40, %v943_v46  ;;  %v959_v46 = vmul.f32 %v1516_v53, %v1516_v53  ;;  %v961_v40 = vmul.f32 %v1556_v63, %v1556_v63 }
 0x17b   : > { %v880_v12 = vadd.f32 %v1690_v32, %v879_v8  ;;  %v1007_v60 = vadd.f32 %v1006_v37, %v944_v21  ;;  %v957_v8 = vmul.f32 %v1524_v55, %v1524_v55 }
 0x17d   : > { %v881_v18 = vadd.f32 %v1706_v36, %v880_v12  ;;  %v1008_v33 = vadd.f32 %v1007_v60, %v945_v56  ;;  %v962_v56 = vmul.f32 %v1532_v57, %v1532_v57  ;;  %v964_v60 = vmul.f32 %v1572_v3, %v1572_v3 }
 0x17f   : > { %v882_v22 = vadd.f32 %v881_v18, %v1476_v43  ;;  %v1009_v50 = vadd.f32 %v1008_v33, %v946_v44  ;;  %v960_v18 = vmul.f32 %v1540_v59, %v1540_v59  ;;  %v965_v33 = vmul.f32 %v1588_v7, %v1588_v7 }
 0x181   : > { %v883_v16 = vadd.f32 %v882_v22, %v1492_v47  ;;  %v1010_v6 = vadd.f32 %v1009_v50, %v947_v17  ;;  %v966_v50 = vmul.f32 %v1564_v1, %v1564_v1 }
 0x183   : > { %v884_v20 = vadd.f32 %v1468_v41, %v883_v16  ;;  %v1011_v54 = vadd.f32 %v1010_v6, %v948_v2  ;;  %v963_v16 = vmul.f32 %v1548_v61, %v1548_v61  ;;  %v967_v6 = vmul.f32 %v1580_v5, %v1580_v5 }
 0x185   : > { %v885_v26 = vadd.f32 %v1484_v45, %v884_v20  ;;  %v1012_v23 = vadd.f32 %v1011_v54, %v949_v35  ;;  %v968_v54 = vmul.f32 %v1604_v11, %v1604_v11 }
 0x187   : > { %v886_v30 = vadd.f32 %v885_v26, %v1508_v51  ;;  %v1013_v4 = vadd.f32 %v1012_v23, %v950_v29  ;;  %v969_v23 = vmul.f32 %v1620_v15, %v1620_v15 }
 0x189   : > { %v887_v24 = vadd.f32 %v886_v30, %v1524_v55  ;;  %v1014_v39 = vadd.f32 %v1013_v4, %v951_v0  ;;  %v970_v4 = vmul.f32 %v1596_v9, %v1596_v9 }
 0x18b   : > { %v888_v28 = vadd.f32 %v1500_v49, %v887_v24  ;;  %v1015_v31 = vadd.f32 %v1014_v39, %v952_v25  ;;  %v971_v39 = vmul.f32 %v1612_v13, %v1612_v13 }
 0x18d   : > { %v889_v34 = vadd.f32 %v1516_v53, %v888_v28  ;;  %v1016_v14 = vadd.f32 %v1015_v31, %v953_v48 }
 0x18f   : > { %v890_v38 = vadd.f32 %v889_v34, %v1540_v59  ;;  %v1017_v27 = vadd.f32 %v1016_v14, %v954_v10 }
 0x191   : > { %v891_v32 = vadd.f32 %v890_v38, %v1556_v63  ;;  %v1018_v58 = vadd.f32 %v1017_v27, %v955_v52  ;;  %v1968_v63 = vld [vmem:[#allocation3_spill] sm:$0xff] }
 0x192   : > { %v972_v31 = vmul.f32 %v1968_v63, %v1968_v63 }
 0x193   : > { %v892_v36 = vadd.f32 %v1532_v57, %v891_v32  ;;  %v1019_v12 = vadd.f32 %v1018_v58, %v956_v19  ;;  %v1969_v57 = vld [vmem:[#allocation5_spill] sm:$0xff]  ;;  %v1978_v58 = vld [vmem:[#allocation10_spill] sm:$0xff] }
 0x194   : > { %v973_v14 = vmul.f32 %v1969_v57, %v1969_v57 }
 0x195   : > { %v893_v43 = vadd.f32 %v1548_v61, %v892_v36  ;;  %v1020_v62 = vadd.f32 %v1019_v12, %v957_v8  ;;  %v1970_v61 = vld [vmem:[#allocation2_spill] sm:$0xff] }
 0x196   : > { %v974_v27 = vmul.f32 %v1970_v61, %v1970_v61 }
 0x197   : > { %v894_v47 = vadd.f32 %v893_v43, %v1572_v3  ;;  %v1021_v21 = vadd.f32 %v1020_v62, %v958_v42  ;;  %v1971_v3 = vld [vmem:[#allocation4_spill] sm:$0xff] }
 0x198   : > { %v1979_v62 = vld [vmem:[#allocation12_spill] sm:$0xff] }
 0x199   : > { %v895_v41 = vadd.f32 %v894_v47, %v1588_v7  ;;  %v1022_v22 = vadd.f32 %v1021_v21, %v959_v46  ;;  %v1972_v7 = vld [vmem:[#allocation7_spill] sm:$0xff] }
 0x19a   : > { %v976_v42 = vmul.f32 %v1972_v7, %v1972_v7 }
 0x19b   : > { %v896_v45 = vadd.f32 %v1564_v1, %v895_v41  ;;  %v1023_v37 = vadd.f32 %v1022_v22, %v960_v18  ;;  %v1973_v1 = vld [vmem:[#allocation9_spill] sm:$0xff] }
 0x19d   : > { %v897_v51 = vadd.f32 %v1580_v5, %v896_v45  ;;  %v1024_v44 = vadd.f32 %v1023_v37, %v961_v40  ;;  %v1974_v5 = vld [vmem:[#allocation6_spill] sm:$0xff]  ;;  %v977_v45 = vmul.f32 %v1973_v1, %v1973_v1 }
 0x19e   : > { %v978_v18 = vmul.f32 %v1974_v5, %v1974_v5 }
 0x19f   : > { %v898_v55 = vadd.f32 %v897_v51, %v1604_v11  ;;  %v1025_v20 = vadd.f32 %v1024_v44, %v962_v56  ;;  %v1975_v11 = vld [vmem:[#allocation8_spill] sm:$0xff]  ;;  %v982_v44 = vmul.f32 %v1978_v58, %v1978_v58 }
 0x1a1   : > { %v899_v49 = vadd.f32 %v898_v55, %v1620_v15  ;;  %v1026_v26 = vadd.f32 %v1025_v20, %v963_v16  ;;  %v1976_v15 = vld [vmem:[#allocation11_spill] sm:$0xff]  ;;  %v979_v55 = vmul.f32 %v1975_v11, %v1975_v11 }
 0x1a3   : > { %v900_v53 = vadd.f32 %v1596_v9, %v899_v49  ;;  %v1027_v30 = vadd.f32 %v1026_v26, %v964_v60  ;;  %v1977_v9 = vld [vmem:[#allocation13_spill] sm:$0xff]  ;;  %v980_v49 = vmul.f32 %v1976_v15, %v1976_v15  ;;  %v983_v60 = vmul.f32 %v1979_v62, %v1979_v62 }
 0x1a4   : > { %v981_v37 = vmul.f32 %v1977_v9, %v1977_v9 }
 0x1a5   : > { %v901_v59 = vadd.f32 %v1612_v13, %v900_v53  ;;  %v1028_v24 = vadd.f32 %v1027_v30, %v965_v33  ;;  %v975_v13 = vmul.f32 %v1971_v3, %v1971_v3 }
 0x1a7   : > { %v902_v17 = vadd.f32 %v901_v59, %v1968_v63  ;;  %v1029_v28 = vadd.f32 %v1028_v24, %v966_v50 }
 0x1a9   : > { %v903_v2 = vadd.f32 %v902_v17, %v1969_v57  ;;  %v1030_v34 = vadd.f32 %v1029_v28, %v967_v6 }
 0x1ab   : > { %v904_v35 = vadd.f32 %v1970_v61, %v903_v2  ;;  %v1031_v38 = vadd.f32 %v1030_v34, %v968_v54 }
 0x1ad   : > { %v905_v29 = vadd.f32 %v1971_v3, %v904_v35  ;;  %v1032_v32 = vadd.f32 %v1031_v38, %v969_v23  ;;  %v1053_v3 = vld [vmem:[%s1931_s3] sm:$0x3] }
 0x1af   : > { %v906_v0 = vadd.f32 %v905_v29, %v1972_v7  ;;  %v1033_v36 = vadd.f32 %v1032_v32, %v970_v4 }
 0x1b1   : > { %v907_v25 = vadd.f32 %v906_v0, %v1973_v1  ;;  %v1034_v43 = vadd.f32 %v1033_v36, %v971_v39 }
 0x1b3   : > { %v908_v48 = vadd.f32 %v1974_v5, %v907_v25  ;;  %v1035_v47 = vadd.f32 %v1034_v43, %v972_v31 }
 0x1b5   : > { %v909_v10 = vadd.f32 %v1975_v11, %v908_v48  ;;  %v1036_v8 = vadd.f32 %v1035_v47, %v973_v14 }
 0x1b7   : > { %v910_v52 = vadd.f32 %v909_v10, %v1976_v15  ;;  %v1037_v12 = vadd.f32 %v1036_v8, %v974_v27 }
 0x1b9   : > { %v911_v19 = vadd.f32 %v910_v52, %v1977_v9  ;;  %v1038_v46 = vadd.f32 %v1037_v12, %v975_v13 }
 0x1bb   : > { %v912_v41 = vadd.f32 %v1978_v58, %v911_v19  ;;  %v1039_v21 = vadd.f32 %v1038_v46, %v976_v42 }
 0x1bd   : > { %v913_v51 = vadd.f32 %v1979_v62, %v912_v41  ;;  %v1040_v40 = vadd.f32 %v1039_v21, %v977_v45 }
 0x1bf   : > { %v914_v22 = vrot.slane %v913_v51, 4  ;;  %v1041_v56 = vadd.f32 %v1040_v40, %v978_v18 }
 0x1c1   : > { %v1042_v53 = vadd.f32 %v1041_v56, %v979_v55  ;;  %v915_v16 = vadd.f32 %v914_v22, %v913_v51 }
 0x1c3   : > { %v1043_v59 = vadd.f32 %v1042_v53, %v980_v49  ;;  %v916_v63 = vrot.slane %v915_v16, 2 }
 0x1c5   : > { %v1044_v20 = vadd.f32 %v1043_v59, %v981_v37  ;;  %v917_v26 = vadd.f32 %v916_v63, %v915_v16 }
 0x1c7   : > { %v1045_v17 = vadd.f32 %v1044_v20, %v982_v44  ;;  %v918_v50 = vrot.slane %v917_v26, 1 }
 0x1c9   : > { %v1046_v33 = vadd.f32 %v1045_v17, %v983_v60  ;;  %v919_v35 = vadd.f32 %v918_v50, %v917_v26 }
 0x1cb   : > { %v1047_v57 = vrot.slane %v1046_v33, 4 }
 0x1cd   : > { %v1048_v2 = vadd.f32 %v1047_v57, %v1046_v33 }
 0x1cf   : > { %v1049_v30 = vrot.slane %v1048_v2, 2 }
 0x1d1   : > { %v1050_v61 = vadd.f32 %v1049_v30, %v1048_v2 }
 0x1d3   : > { %v1051_v6 = vrot.slane %v1050_v61, 1 }
 0x1d5   : > { %v1052_v24 = vadd.f32 %v1051_v6, %v1050_v61 }
 0x1d7   : > { %v1055_v29 = vsel %vm1054_vm0, %v919_v35, %v1052_v24 }
 0x1d8   : > { %v1056_v54 = vadd.f32 %v1055_v29, %v1053_v3 }
 0x1da   : > { %1057 = vst [vmem:[%s1931_s3] sm:$0x3] %v1056_v54 }
 0x1db PF: > { %s14_s12 = sadd.s32 1, %s1363_s12  }
 0x1dc   : > { %p11_p5 = scmp.ge.s32.totalorder %s14_s12, 4  }
 0x1de   :  { %13 = sbr.rel (!%p11_p5) target bundleno = 1 (0x1), region = 70 }

// kernel: mlp_forward.4
= control target key start
LH: loop header
LB: loop body
LE: loop exit
PB: predicated region body
PF: predicated region fallthrough
CT: control target
= control target key end

     0   :  { %s1434_s18 = smov 0   ;;  %s2190_s0 = inlined_call_operand.vmem [shape: f32[1024,128], index: 0, kind: input, shape index: {}]   ;;  %s2191_s1 = inlined_call_operand.vmem [shape: f32[1,128], index: 1, kind: input, shape index: {}]   ;;  %s2192_s2 = inlined_call_operand.vmem [shape: f32[1,128], index: 2, kind: input, shape index: {}]   ;;  %s2193_s3 = inlined_call_operand.vmem [shape: bf16[128,128], index: 3, kind: input, shape index: {}]   ;;  %s2194_s4 = inlined_call_operand.vmem [shape: f32[1024,128], index: 4, kind: output, shape index: {0}]   ;;  %s2195_s5 = inlined_call_operand.vmem [shape: f32[2,128], index: 5, kind: output, shape index: {1}]  }
   0x1 LB: > { %s1220_s19 = sadd.s32 4294967295, %s1401_s18   ;;  %p1224_p0 = scmp.ge.s32.totalorder %s1401_s18, 1  ;;  %s1401_s18 = sphi %s1434_s18, %s16_s18  }
   0x2   : > { %p186_p1 = scmp.lt.s32.totalorder %s1401_s18, 3 }
   0x4   : > { %p187_p2 = pnand %p1224_p0, %p186_p1 }
   0x6   : > { %190 = sbr.rel (%p187_p2) target bundleno = 475 (0x1db), region = 36 }
   0xd   : > { %v1387_v0 = vld [vmem:[%s2193_s3] sm:$0xff]   ;;  %s1225_s22 = sshll.u32 %s1220_s19, 6  ;;  %v1388_v1 = vld [vmem:[%s2193_s3 + $0x8] sm:$0xff]   ;;  %v1389_v2 = vld [vmem:[%s2193_s3 + $0x10] sm:$0xff]   ;;  %p1239_p4 = scmp.ne.s32.totalorder %s1220_s19, 0 }
   0xe   : > { %p215_p3 = scmp.lt.s32.totalorder %s1225_s22, 127  ;;  %1282 = vmatprep.subr.bf16.mxu0 %v1387_v0  ;;  %1362 = vmatprep.subr.bf16.mxu1 %v1387_v0  ;;  %v1390_v3 = vld [vmem:[%s2193_s3 + $0x18] sm:$0xff]   ;;  %v1471_v6 = vld [vmem:[%s2191_s1] ss:$0 sm:$0xff]  ;;  %v1392_v39 = vld [vmem:[%s2193_s3 + $0x28] sm:$0xff]  }
   0xf   : > { %1283 = vmatpush3.bf16.msra.mxu0 %v1387_v0  ;;  %1370 = vmatpush3.bf16.msra.mxu1 %v1387_v0  ;;  %v1478_v9 = vld [vmem:[%s2192_s2] ss:$0 sm:$0xff]  ;;  %v1393_v56 = vld [vmem:[%s2193_s3 + $0x30] sm:$0xff]  }
  0x10   : > { %s2245_s22 = smov (!%p215_p3, %s1225_s22), 127  ;;  %1284 = vmatprep.subr.bf16.mxu0 %v1388_v1  ;;  %1363 = vmatprep.subr.bf16.mxu1 %v1388_v1  ;;  %v1391_v21 = vld [vmem:[%s2193_s3 + $0x20] sm:$0xff]  }
  0x11   : > { %s1226_s27 = sshll.u32 %s2245_s22, 3 }
  0x12   : > { %s1461_s30 = scalar_lea.vmem %s2190_s0, %s1226_s27  ;;  %s1726_s25 = scalar_lea.vmem %s2194_s4, %s1226_s27 }
  0x13   : > { %1285 = vmatpush3.bf16.msra.mxu0 %v1388_v1  ;;  %1371 = vmatpush3.bf16.msra.mxu1 %v1388_v1  ;;  %v227_v4 = vld [vmem:[%s1461_s30] sm:$0xff]  ;;  %v228_v5 = vld [vmem:[%s1461_s30 + $0x8] sm:$0xff]  ;;  %v229_v14 = vld [vmem:[%s1461_s30 + $0x10] sm:$0xff] }
  0x14   : > { %1286 = vmatprep.subr.bf16.mxu0 %v1389_v2  ;;  %1364 = vmatprep.subr.bf16.mxu1 %v1389_v2  ;;  %v298_v7 = vmul.f32 %v1471_v6, %v227_v4  ;;  %v299_v8 = vmul.f32 %v1471_v6, %v228_v5  ;;  %v259_v10 = vld [vmem:[%s1461_s30 + $0x100] sm:$0xff]  ;;  %v260_v11 = vld [vmem:[%s1461_s30 + $0x108] sm:$0xff]  ;;  %v230_v15 = vld [vmem:[%s1461_s30 + $0x18] sm:$0xff]  ;;  %v300_v19 = vmul.f32 %v1471_v6, %v229_v14 }
  0x15   : > { %v330_v12 = vmul.f32 %v1471_v6, %v259_v10  ;;  %v331_v13 = vmul.f32 %v1471_v6, %v260_v11  ;;  %v261_v16 = vld [vmem:[%s1461_s30 + $0x110] sm:$0xff]  ;;  %v262_v20 = vld [vmem:[%s1461_s30 + $0x118] sm:$0xff]  ;;  %v301_v24 = vmul.f32 %v1471_v6, %v230_v15  ;;  %v231_v25 = vld [vmem:[%s1461_s30 + $0x20] sm:$0xff] }
  0x16   : > { %v369_v17 = vadd.f32 %v1478_v9, %v298_v7  ;;  %v370_v18 = vadd.f32 %v1478_v9, %v299_v8  ;;  %v332_v28 = vmul.f32 %v1471_v6, %v261_v16  ;;  %v232_v29 = vld [vmem:[%s1461_s30 + $0x28] sm:$0xff]  ;;  %v333_v32 = vmul.f32 %v1471_v6, %v262_v20  ;;  %v263_v33 = vld [vmem:[%s1461_s30 + $0x120] sm:$0xff]  ;;  %v233_v38 = vld [vmem:[%s1461_s30 + $0x30] sm:$0xff] }
  0x17   : > { %1287 = vmatpush3.bf16.msra.mxu0 %v1389_v2  ;;  %1372 = vmatpush3.bf16.msra.mxu1 %v1389_v2  ;;  %v401_v22 = vadd.f32 %v1478_v9, %v330_v12  ;;  %v402_v23 = vadd.f32 %v1478_v9, %v331_v13  ;;  %v264_v34 = vld [vmem:[%s1461_s30 + $0x128] sm:$0xff]  ;;  %v371_v36 = vadd.f32 %v1478_v9, %v300_v19  ;;  %v234_v43 = vld [vmem:[%s1461_s30 + $0x38] sm:$0xff]  ;;  %v265_v47 = vld [vmem:[%s1461_s30 + $0x130] sm:$0xff] }
  0x18   : > { %1288 = vmatprep.subr.bf16.mxu0 %v1390_v3  ;;  %1365 = vmatprep.subr.bf16.mxu1 %v1390_v3  ;;  %v433_v26 = vmax.f32 %v369_v17, 0.0  ;;  %v434_v27 = vmax.f32 %v370_v18, 0.0  ;;  %v302_v37 = vmul.f32 %v1471_v6, %v231_v25  ;;  %v372_v41 = vadd.f32 %v1478_v9, %v301_v24  ;;  %v266_v52 = vld [vmem:[%s1461_s30 + $0x138] sm:$0xff]  ;;  %v235_v61 = vld [vmem:[%s1461_s30 + $0x40] sm:$0xff]  ;;  %v236_v1 = vld [vmem:[%s1461_s30 + $0x48] sm:$0xff] }
  0x19   : > { %v465_v30 = vmax.f32 %v401_v22, 0.0  ;;  %v466_v31 = vmax.f32 %v402_v23, 0.0  ;;  %v303_v42 = vmul.f32 %v1471_v6, %v232_v29  ;;  %v403_v44 = vadd.f32 %v1478_v9, %v332_v28  ;;  %v267_v7 = vld [vmem:[%s1461_s30 + $0x140] sm:$0xff]  ;;  %v268_v8 = vld [vmem:[%s1461_s30 + $0x148] sm:$0xff]  ;;  %v237_v14 = vld [vmem:[%s1461_s30 + $0x50] sm:$0xff] }
  0x1a   : > { %v497_v35 = vpack.c.bf16 %v434_v27, %v433_v26  ;;  %v334_v45 = vmul.f32 %v1471_v6, %v263_v33  ;;  %v335_v46 = vmul.f32 %v1471_v6, %v264_v34  ;;  %v404_v48 = vadd.f32 %v1478_v9, %v333_v32  ;;  %v238_v15 = vld [vmem:[%s1461_s30 + $0x58] sm:$0xff] }
  0x1b   : > { %1289 = vmatpush3.bf16.msra.mxu0 %v1390_v3  ;;  %1373 = vmatpush3.bf16.msra.mxu1 %v1390_v3  ;;  %v513_v40 = vpack.c.bf16 %v466_v31, %v465_v30  ;;  %v373_v49 = vadd.f32 %v1478_v9, %v302_v37  ;;  %v374_v50 = vadd.f32 %v1478_v9, %v303_v42  ;;  %v435_v57 = vmax.f32 %v371_v36, 0.0  ;;  %v1394_v16 = vld [vmem:[%s2193_s3 + $0x38] sm:$0xff]   ;;  %v239_v31 = vld [vmem:[%s1461_s30 + $0x60] sm:$0xff] }
  0x1c   : > { %1290 = vmatprep.subr.bf16.mxu0 %v1391_v21  ;;  %1366 = vmatprep.subr.bf16.mxu1 %v1391_v21  ;;  %v304_v51 = vmul.f32 %v1471_v6, %v233_v38  ;;  %v405_v53 = vadd.f32 %v1478_v9, %v334_v45  ;;  %v406_v54 = vadd.f32 %v1478_v9, %v335_v46  ;;  %v436_v58 = vmax.f32 %v372_v41, 0.0  ;;  %v270_v26 = vld [vmem:[%s1461_s30 + $0x158] sm:$0xff]  ;;  %v241_v45 = vld [vmem:[%s1461_s30 + $0x70] sm:$0xff] }
  0x1d   : > { %1298 = vmatprep.mubr.bf16.mxu0 %v497_v35  ;;  %1330 = vmatprep.mubr.bf16.mxu1 %v513_v40  ;;  %v305_v55 = vmul.f32 %v1471_v6, %v234_v43  ;;  %v336_v60 = vmul.f32 %v1471_v6, %v265_v47  ;;  %v467_v62 = vmax.f32 %v403_v44, 0.0  ;;  %v337_v0 = vmul.f32 %v1471_v6, %v266_v52  ;;  %v240_v35 = vld [vmem:[%s1461_s30 + $0x68] sm:$0xff] }
  0x1e   : > { %v375_v59 = vadd.f32 %v1478_v9, %v304_v51  ;;  %v468_v2 = vmax.f32 %v404_v48, 0.0  ;;  %v437_v3 = vmax.f32 %v373_v49, 0.0  ;;  %v438_v4 = vmax.f32 %v374_v50, 0.0  ;;  %v272_v40 = vld [vmem:[%s1461_s30 + $0x168] sm:$0xff]  ;;  %v242_v50 = vld [vmem:[%s1461_s30 + $0x78] sm:$0xff] }
  0x1f   : > { %1291 = vmatpush3.bf16.msra.mxu0 %v1391_v21  ;;  %1374 = vmatpush3.bf16.msra.mxu1 %v1391_v21  ;;  %v376_v63 = vadd.f32 %v1478_v9, %v305_v55  ;;  %v407_v5 = vadd.f32 %v1478_v9, %v336_v60  ;;  %v469_v10 = vmax.f32 %v405_v53, 0.0  ;;  %v470_v11 = vmax.f32 %v406_v54, 0.0  ;;  %v269_v21 = vld [vmem:[%s1461_s30 + $0x150] sm:$0xff] }
  0x20   : > { %1292 = vmatprep.subr.bf16.mxu0 %v1392_v39  ;;  %1367 = vmatprep.subr.bf16.mxu1 %v1392_v39  ;;  %v408_v12 = vadd.f32 %v1478_v9, %v337_v0  ;;  %v306_v13 = vmul.f32 %v1471_v6, %v235_v61  ;;  %v498_v17 = vpack.c.bf16 %v436_v58, %v435_v57  ;;  %v439_v18 = vmax.f32 %v375_v59, 0.0  ;;  %v273_v59 = vld [vmem:[%s1461_s30 + $0x170] sm:$0xff] }
  0x21   : > { %v440_v19 = vmax.f32 %v376_v63, 0.0  ;;  %v307_v20 = vmul.f32 %v1471_v6, %v236_v1  ;;  %v471_v22 = vmax.f32 %v407_v5, 0.0  ;;  %v338_v24 = vmul.f32 %v1471_v6, %v267_v7  ;;  %v243_v5 = vld [vmem:[%s1461_s30 + $0x80] sm:$0xff] }
  0x22   : > { %v472_v23 = vmax.f32 %v408_v12, 0.0  ;;  %v339_v25 = vmul.f32 %v1471_v6, %v268_v8  ;;  %v514_v27 = vpack.c.bf16 %v468_v2, %v467_v62  ;;  %v499_v28 = vpack.c.bf16 %v438_v4, %v437_v3  ;;  %v274_v4 = vld [vmem:[%s1461_s30 + $0x178] sm:$0xff]  ;;  %v244_v12 = vld [vmem:[%s1461_s30 + $0x88] sm:$0xff] }
  0x23   : > { %1293 = vmatpush3.bf16.msra.mxu0 %v1392_v39  ;;  %1375 = vmatpush3.bf16.msra.mxu1 %v1392_v39  ;;  %v308_v29 = vmul.f32 %v1471_v6, %v237_v14  ;;  %v309_v30 = vmul.f32 %v1471_v6, %v238_v15  ;;  %v515_v32 = vpack.c.bf16 %v470_v11, %v469_v10  ;;  %v271_v39 = vld [vmem:[%s1461_s30 + $0x160] sm:$0xff] }
  0x24   : > { %1294 = vmatprep.subr.bf16.mxu0 %v1393_v56  ;;  %1368 = vmatprep.subr.bf16.mxu1 %v1393_v56  ;;  %v1552_v33 = vadd.f32 %v1478_v9, %v306_v13  ;;  %v340_v34 = vmul.f32 %v1471_v6, %v269_v21  ;;  %v1556_v36 = vpack.c.bf16 %v440_v19, %v439_v18  ;;  %v275_v13 = vld [vmem:[%s1461_s30 + $0x180] sm:$0xff]  ;;  %v276_v18 = vld [vmem:[%s1461_s30 + $0x188] sm:$0xff]  ;;  %v245_v19 = vld [vmem:[%s1461_s30 + $0x90] sm:$0xff] }
  0x25   : > { %v378_v37 = vadd.f32 %v1478_v9, %v307_v20  ;;  %v341_v38 = vmul.f32 %v1471_v6, %v270_v26  ;;  %v1562_v41 = vpack.c.bf16 %v472_v23, %v471_v22  ;;  %v409_v42 = vadd.f32 %v1478_v9, %v338_v24  ;;  %v246_v24 = vld [vmem:[%s1461_s30 + $0x98] sm:$0xff] }
  0x26   : > { %v410_v43 = vadd.f32 %v1478_v9, %v339_v25  ;;  %v310_v44 = vmul.f32 %v1471_v6, %v239_v31  ;;  %v379_v46 = vadd.f32 %v1478_v9, %v308_v29  ;;  %v380_v47 = vadd.f32 %v1478_v9, %v309_v30  ;;  %v277_v29 = vld [vmem:[%s1461_s30 + $0x190] sm:$0xff] }
  0x27   : > { %1295 = vmatpush3.bf16.msra.mxu0 %v1393_v56  ;;  %1376 = vmatpush3.bf16.msra.mxu1 %v1393_v56  ;;  %v411_v48 = vadd.f32 %v1478_v9, %v340_v34  ;;  %v311_v49 = vmul.f32 %v1471_v6, %v240_v35  ;;  %v441_v51 = vmax.f32 %v1552_v33, 0.0  ;;  %v412_v52 = vadd.f32 %v1478_v9, %v341_v38  ;;  %v278_v34 = vld [vmem:[%s1461_s30 + $0x198] sm:$0xff] }
  0x28   : > { %1296 = vmatprep.subr.bf16.mxu0 %v1394_v16  ;;  %1369 = vmatprep.subr.bf16.mxu1 %v1394_v16  ;;  %v342_v53 = vmul.f32 %v1471_v6, %v271_v39  ;;  %v343_v54 = vmul.f32 %v1471_v6, %v272_v40  ;;  %v442_v55 = vmax.f32 %v378_v37, 0.0  ;;  %v381_v56 = vadd.f32 %v1478_v9, %v310_v44  ;;  %v247_v40 = vld [vmem:[%s1461_s30 + $0xa0] sm:$0xff] }
  0x29   : > { %v382_v57 = vadd.f32 %v1478_v9, %v311_v49  ;;  %v312_v58 = vmul.f32 %v1471_v6, %v241_v45  ;;  %v473_v60 = vmax.f32 %v409_v42, 0.0  ;;  %v313_v63 = vmul.f32 %v1471_v6, %v242_v50  ;;  %v279_v50 = vld [vmem:[%s1461_s30 + $0x1a0] sm:$0xff] }
  0x2a   : > { %v413_v61 = vadd.f32 %v1478_v9, %v342_v53  ;;  %v414_v62 = vadd.f32 %v1478_v9, %v343_v54  ;;  %v474_v0 = vmax.f32 %v410_v43, 0.0  ;;  %v443_v1 = vmax.f32 %v379_v46, 0.0  ;;  %v248_v46 = vld [vmem:[%s1461_s30 + $0xa8] sm:$0xff] }
  0x2b   : > { %1297 = vmatpush3.bf16.msra.mxu0 %v1394_v16  ;;  %1377 = vmatpush3.bf16.msra.mxu1 %v1394_v16  ;;  %v444_v2 = vmax.f32 %v380_v47, 0.0  ;;  %v383_v3 = vadd.f32 %v1478_v9, %v312_v58  ;;  %v475_v7 = vmax.f32 %v411_v48, 0.0  ;;  %v476_v8 = vmax.f32 %v412_v52, 0.0 }
  0x2c   : > { %v384_v10 = vadd.f32 %v1478_v9, %v313_v63  ;;  %v344_v11 = vmul.f32 %v1471_v6, %v273_v59  ;;  %v445_v14 = vmax.f32 %v381_v56, 0.0  ;;  %v446_v15 = vmax.f32 %v382_v57, 0.0 }
  0x2d   : > { %v477_v16 = vmax.f32 %v413_v61, 0.0  ;;  %v447_v20 = vmax.f32 %v383_v3, 0.0  ;;  %v345_v22 = vmul.f32 %v1471_v6, %v274_v4  ;;  %v314_v23 = vmul.f32 %v1471_v6, %v243_v5 }
  0x2e   : > { %1299 = vmatmul.mubr.bf16.vlgmr.msra.gmra.mrb[0].mxu0 %v498_v17  ;;  %1331 = vmatmul.mubr.bf16.vlgmr.msra.gmra.mrb[0].mxu1 %v514_v27  ;;  %v478_v17 = vmax.f32 %v414_v62, 0.0  ;;  %v448_v21 = vmax.f32 %v384_v10, 0.0  ;;  %v501_v25 = vpack.c.bf16 %v442_v55, %v441_v51  ;;  %v517_v26 = vpack.c.bf16 %v474_v0, %v473_v60  ;;  %v280_v51 = vld [vmem:[%s1461_s30 + $0x1a8] sm:$0xff]  ;;  %v249_v55 = vld [vmem:[%s1461_s30 + $0xb0] sm:$0xff] }
  0x2f   : > { %1302 = vmatprep.mubr.bf16.mxu0 %v499_v28  ;;  %1334 = vmatprep.mubr.bf16.mxu1 %v515_v32  ;;  %v315_v27 = vmul.f32 %v1471_v6, %v244_v12  ;;  %v346_v28 = vmul.f32 %v1471_v6, %v275_v13  ;;  %v502_v30 = vpack.c.bf16 %v444_v2, %v443_v1  ;;  %v250_v2 = vld [vmem:[%s1461_s30 + $0xb8] sm:$0xff]  ;;  %v281_v10 = vld [vmem:[%s1461_s30 + $0x1b0] sm:$0xff] }
  0x30   : > { %v415_v31 = vadd.f32 %v1478_v9, %v344_v11  ;;  %v347_v32 = vmul.f32 %v1471_v6, %v276_v18  ;;  %v316_v33 = vmul.f32 %v1471_v6, %v245_v19  ;;  %v518_v35 = vpack.c.bf16 %v476_v8, %v475_v7 }
  0x31   : > { %v503_v37 = vpack.c.bf16 %v446_v15, %v445_v14  ;;  %v519_v38 = vpack.c.bf16 %v478_v17, %v477_v16  ;;  %v317_v39 = vmul.f32 %v1471_v6, %v246_v24  ;;  %v1605_v42 = vpack.c.bf16 %v448_v21, %v447_v20  ;;  %v282_v15 = vld [vmem:[%s1461_s30 + $0x1b8] sm:$0xff]  ;;  %v251_v20 = vld [vmem:[%s1461_s30 + $0xc0] sm:$0xff]  ;;  %v252_v21 = vld [vmem:[%s1461_s30 + $0xc8] sm:$0xff] }
  0x32   : > { %v416_v43 = vadd.f32 %v1478_v9, %v345_v22  ;;  %v385_v44 = vadd.f32 %v1478_v9, %v314_v23  ;;  %v348_v45 = vmul.f32 %v1471_v6, %v277_v29  ;;  %v386_v47 = vadd.f32 %v1478_v9, %v315_v27 }
  0x33   : > { %v417_v48 = vadd.f32 %v1478_v9, %v346_v28  ;;  %v349_v49 = vmul.f32 %v1471_v6, %v278_v34  ;;  %v479_v52 = vmax.f32 %v415_v31, 0.0  ;;  %v418_v53 = vadd.f32 %v1478_v9, %v347_v32  ;;  %v284_v32 = vld [vmem:[%s1461_s30 + $0x1c8] sm:$0xff] }
  0x34   : > { %v387_v54 = vadd.f32 %v1478_v9, %v316_v33  ;;  %v419_v56 = vadd.f32 %v1478_v9, %v348_v45  ;;  %v319_v58 = vmul.f32 %v1471_v6, %v248_v46  ;;  %v480_v59 = vmax.f32 %v416_v43, 0.0  ;;  %v286_v45 = vld [vmem:[%s1461_s30 + $0x1d8] sm:$0xff] }
  0x35   : > { %v420_v57 = vadd.f32 %v1478_v9, %v349_v49  ;;  %v350_v61 = vmul.f32 %v1471_v6, %v279_v50  ;;  %v351_v62 = vmul.f32 %v1471_v6, %v280_v51  ;;  %v449_v63 = vmax.f32 %v385_v44, 0.0  ;;  %v255_v50 = vld [vmem:[%s1461_s30 + $0xe0] sm:$0xff] }
  0x36   : > { %1303 = vmatmul.mubr.bf16.gmra.mrb[4].mxu0 %v1556_v36  ;;  %1335 = vmatmul.mubr.bf16.gmra.mrb[4].mxu1 %v1562_v41  ;;  %v318_v36 = vmul.f32 %v1471_v6, %v247_v40  ;;  %v388_v41 = vadd.f32 %v1478_v9, %v317_v39  ;;  %v450_v0 = vmax.f32 %v386_v47, 0.0  ;;  %v390_v1 = vadd.f32 %v1478_v9, %v319_v58  ;;  %v287_v58 = vld [vmem:[%s1461_s30 + $0x1e0] sm:$0xff] }
  0x37   : > { %1306 = vmatprep.mubr.bf16.mxu0 %v501_v25  ;;  %1338 = vmatprep.mubr.bf16.mxu1 %v517_v26  ;;  %v320_v3 = vmul.f32 %v1471_v6, %v249_v55  ;;  %v481_v4 = vmax.f32 %v417_v48, 0.0  ;;  %v482_v5 = vmax.f32 %v418_v53, 0.0  ;;  %v421_v7 = vadd.f32 %v1478_v9, %v350_v61  ;;  %v283_v25 = vld [vmem:[%s1461_s30 + $0x1c0] sm:$0xff]  ;;  %v253_v26 = vld [vmem:[%s1461_s30 + $0xd0] sm:$0xff] }
  0x38   : > { %v389_v60 = vadd.f32 %v1478_v9, %v318_v36  ;;  %v422_v8 = vadd.f32 %v1478_v9, %v351_v62  ;;  %v451_v11 = vmax.f32 %v387_v54, 0.0  ;;  %v452_v12 = vmax.f32 %v388_v41, 0.0  ;;  %v256_v36 = vld [vmem:[%s1461_s30 + $0xe8] sm:$0xff] }
  0x39   : > { %v483_v13 = vmax.f32 %v419_v56, 0.0  ;;  %v484_v14 = vmax.f32 %v420_v57, 0.0  ;;  %v520_v16 = vpack.c.bf16 %v480_v59, %v479_v52  ;;  %v454_v18 = vmax.f32 %v390_v1, 0.0  ;;  %v288_v59 = vld [vmem:[%s1461_s30 + $0x1e8] sm:$0xff] }
  0x3a   : > { %v453_v17 = vmax.f32 %v389_v60, 0.0  ;;  %v321_v19 = vmul.f32 %v1471_v6, %v250_v2  ;;  %v505_v22 = vpack.c.bf16 %v450_v0, %v449_v63  ;;  %v1640_v23 = vadd.f32 %v1478_v9, %v320_v3  ;;  %v257_v0 = vld [vmem:[%s1461_s30 + $0xf0] sm:$0xff] }
  0x3b   : > { %v352_v24 = vmul.f32 %v1471_v6, %v281_v10  ;;  %v521_v27 = vpack.c.bf16 %v482_v5, %v481_v4  ;;  %v485_v28 = vmax.f32 %v421_v7, 0.0  ;;  %v486_v29 = vmax.f32 %v422_v8, 0.0  ;;  %v258_v5 = vld [vmem:[%s1461_s30 + $0xf8] sm:$0xff] }
  0x3c   : > { %v353_v31 = vmul.f32 %v1471_v6, %v282_v15  ;;  %v1648_v33 = vpack.c.bf16 %v452_v12, %v451_v11  ;;  %v1650_v34 = vpack.c.bf16 %v484_v14, %v483_v13  ;;  %v323_v39 = vmul.f32 %v1471_v6, %v252_v21 }
  0x3d   : > { %v1658_v40 = vadd.f32 %v1478_v9, %v321_v19  ;;  %v354_v43 = vmul.f32 %v1471_v6, %v283_v25  ;;  %v324_v44 = vmul.f32 %v1471_v6, %v253_v26  ;;  %v455_v46 = vmax.f32 %v1640_v23, 0.0 }
  0x3e   : > { %1307 = vmatmul.mubr.bf16.gmra.mrb[8].mxu0 %v502_v30  ;;  %1339 = vmatmul.mubr.bf16.gmra.mrb[8].mxu1 %v518_v35  ;;  %v254_v30 = vld [vmem:[%s1461_s30 + $0xd8] sm:$0xff]  ;;  %v322_v35 = vmul.f32 %v1471_v6, %v251_v20  ;;  %v1665_v47 = vadd.f32 %v1478_v9, %v352_v24  ;;  %v355_v48 = vmul.f32 %v1471_v6, %v284_v32 }
  0x3f   : > { %1310 = vmatprep.mubr.bf16.mxu0 %v503_v37  ;;  %1342 = vmatprep.mubr.bf16.mxu1 %v519_v38  ;;  %v285_v37 = vld [vmem:[%s1461_s30 + $0x1d0] sm:$0xff]  ;;  %v1655_v38 = vpack.c.bf16 %v454_v18, %v453_v17  ;;  %v325_v49 = vmul.f32 %v1471_v6, %v254_v30  ;;  %v523_v51 = vpack.c.bf16 %v486_v29, %v485_v28 }
  0x40   : > { %v1671_v52 = vadd.f32 %v1478_v9, %v353_v31  ;;  %v395_v53 = vadd.f32 %v1478_v9, %v324_v44  ;;  %v356_v54 = vmul.f32 %v1471_v6, %v285_v37  ;;  %v1677_v55 = vadd.f32 %v1478_v9, %v322_v35 }
  0x41   : > { %v1680_v41 = vadd.f32 %v1478_v9, %v323_v39  ;;  %v396_v56 = vadd.f32 %v1478_v9, %v325_v49  ;;  %v357_v57 = vmul.f32 %v1471_v6, %v286_v45  ;;  %v425_v60 = vadd.f32 %v1478_v9, %v354_v43 }
  0x42   : > { %v459_v61 = vmax.f32 %v395_v53, 0.0  ;;  %v427_v62 = vadd.f32 %v1478_v9, %v356_v54  ;;  %v326_v63 = vmul.f32 %v1471_v6, %v255_v50  ;;  %v426_v1 = vadd.f32 %v1478_v9, %v355_v48 }
  0x43   : > { %v460_v2 = vmax.f32 %v396_v56, 0.0  ;;  %v428_v3 = vadd.f32 %v1478_v9, %v357_v57  ;;  %v327_v4 = vmul.f32 %v1471_v6, %v256_v36  ;;  %v358_v10 = vmul.f32 %v1471_v6, %v287_v58 }
  0x44   : > { %v491_v7 = vmax.f32 %v427_v62, 0.0  ;;  %v397_v8 = vadd.f32 %v1478_v9, %v326_v63  ;;  %v359_v11 = vmul.f32 %v1471_v6, %v288_v59  ;;  %v328_v15 = vmul.f32 %v1471_v6, %v257_v0 }
  0x45   : > { %v510_v12 = vpack.c.bf16 %v460_v2, %v459_v61  ;;  %v492_v13 = vmax.f32 %v428_v3, 0.0  ;;  %v398_v14 = vadd.f32 %v1478_v9, %v327_v4  ;;  %v429_v18 = vadd.f32 %v1478_v9, %v358_v10 }
  0x46   : > { %1311 = vmatmul.mubr.bf16.gmra.mrb[12].mxu0 %v1605_v42  ;;  %1343 = vmatmul.mubr.bf16.gmra.mrb[12].mxu1 %v520_v16  ;;  %v289_v42 = vld [vmem:[%s1461_s30 + $0x1f0] sm:$0xff]  ;;  %v290_v16 = vld [vmem:[%s1461_s30 + $0x1f8] sm:$0xff]  ;;  %v461_v17 = vmax.f32 %v397_v8, 0.0  ;;  %v430_v19 = vadd.f32 %v1478_v9, %v359_v11  ;;  %v329_v20 = vmul.f32 %v1471_v6, %v258_v5  ;;  %v399_v24 = vadd.f32 %v1478_v9, %v328_v15 }
  0x47   : > { %1314 = vmatprep.mubr.bf16.mxu0 %v505_v22  ;;  %1346 = vmatprep.mubr.bf16.mxu1 %v521_v27  ;;  %v526_v21 = vpack.c.bf16 %v492_v13, %v491_v7  ;;  %v462_v22 = vmax.f32 %v398_v14, 0.0  ;;  %v360_v25 = vmul.f32 %v1471_v6, %v289_v42  ;;  %v493_v26 = vmax.f32 %v429_v18, 0.0 }
  0x48   : > { %v494_v27 = vmax.f32 %v430_v19, 0.0  ;;  %v400_v28 = vadd.f32 %v1478_v9, %v329_v20  ;;  %v361_v29 = vmul.f32 %v1471_v6, %v290_v16  ;;  %v456_v31 = vmax.f32 %v1658_v40, 0.0 }
  0x49   : > { %v511_v32 = vpack.c.bf16 %v462_v22, %v461_v17  ;;  %v463_v30 = vmax.f32 %v399_v24, 0.0  ;;  %v431_v35 = vadd.f32 %v1478_v9, %v360_v25  ;;  %v487_v39 = vmax.f32 %v1665_v47, 0.0 }
  0x4a   : > { %v527_v37 = vpack.c.bf16 %v494_v27, %v493_v26  ;;  %v464_v43 = vmax.f32 %v400_v28, 0.0  ;;  %v432_v44 = vadd.f32 %v1478_v9, %v361_v29  ;;  %v488_v45 = vmax.f32 %v1671_v52, 0.0 }
  0x4b   : > { %v457_v6 = vmax.f32 %v1677_v55, 0.0  ;;  %v458_v40 = vmax.f32 %v1680_v41, 0.0  ;;  %v495_v48 = vmax.f32 %v431_v35, 0.0  ;;  %v489_v49 = vmax.f32 %v425_v60, 0.0 }
  0x4c   : > { %v490_v47 = vmax.f32 %v426_v1, 0.0  ;;  %v512_v50 = vpack.c.bf16 %v464_v43, %v463_v30  ;;  %v496_v53 = vmax.f32 %v432_v44, 0.0 }
  0x4d   : > { %v509_v54 = vpack.c.bf16 %v458_v40, %v457_v6 }
  0x4e   : > { %1315 = vmatmul.mubr.bf16.gmra.mrb[16].mxu0 %v1648_v33  ;;  %1347 = vmatmul.mubr.bf16.gmra.mrb[16].mxu1 %v1650_v34  ;;  %v528_v9 = vpack.c.bf16 %v496_v53, %v495_v48  ;;  %v508_v33 = vpack.c.bf16 %v456_v31, %v455_v46  ;;  %v524_v34 = vpack.c.bf16 %v488_v45, %v487_v39 }
  0x4f   : > { %1318 = vmatprep.mubr.bf16.mxu0 %v1655_v38  ;;  %1350 = vmatprep.mubr.bf16.mxu1 %v523_v51  ;;  %v525_v52 = vpack.c.bf16 %v490_v47, %v489_v49 }
  0x56   : > { %1319 = vmatmul.mubr.bf16.gmra.mrb[20].mxu0 %v508_v33  ;;  %1351 = vmatmul.mubr.bf16.gmra.mrb[20].mxu1 %v524_v34 }
  0x57   : > { %1322 = vmatprep.mubr.bf16.mxu0 %v509_v54  ;;  %1354 = vmatprep.mubr.bf16.mxu1 %v525_v52 }
  0x5e   : > { %1323 = vmatmul.mubr.bf16.gmra.mrb[24].mxu0 %v510_v12  ;;  %1355 = vmatmul.mubr.bf16.gmra.mrb[24].mxu1 %v526_v21 }
  0x5f   : > { %1326 = vmatprep.mubr.bf16.mxu0 %v511_v32  ;;  %1358 = vmatprep.mubr.bf16.mxu1 %v527_v37 }
  0x66   : > { %1327 = vmatmul.mubr.bf16.gmra.mrb[28].mxu0 %v512_v50  ;;  %1359 = vmatmul.mubr.bf16.gmra.mrb[28].mxu1 %v528_v9 }
 0x101   : > { %v1728_v23 = vpop.f32.mrb[0].mxu0  ;;  %v1730_v38 = vpop.f32.mrb[0].mxu1 }
 0x102   : > { %884 = vst [vmem:[%s1726_s25 + $0x10] sm:$0xff] %v1728_v23  ;;  %916 = vst [vmem:[%s1726_s25 + $0x110] sm:$0xff] %v1730_v38  ;;  %v1736_v46 = vpop.f32.mrb[1].mxu0  ;;  %v1738_v51 = vpop.f32.mrb[1].mxu1 }
 0x103   : > { %882 = vst [vmem:[%s1726_s25] sm:$0xff] %v1736_v46  ;;  %914 = vst [vmem:[%s1726_s25 + $0x100] sm:$0xff] %v1738_v51  ;;  %v1744_v36 = vpop.f32.mrb[2].mxu0  ;;  %v1746_v55 = vpop.f32.mrb[2].mxu1 }
 0x104   : > { %885 = vst [vmem:[%s1726_s25 + $0x18] sm:$0xff] %v1744_v36  ;;  %917 = vst [vmem:[%s1726_s25 + $0x118] sm:$0xff] %v1746_v55  ;;  %v1752_v41 = vpop.f32.mrb[3].mxu0  ;;  %v1754_v56 = vpop.f32.mrb[3].mxu1 }
 0x105   : > { %883 = vst [vmem:[%s1726_s25 + $0x8] sm:$0xff] %v1752_v41  ;;  %915 = vst [vmem:[%s1726_s25 + $0x108] sm:$0xff] %v1754_v56 }
 0x109   : > { %v1760_v57 = vpop.f32.mrb[4].mxu0  ;;  %v1762_v58 = vpop.f32.mrb[4].mxu1 }
 0x10a   : > { %888 = vst [vmem:[%s1726_s25 + $0x30] sm:$0xff] %v1760_v57  ;;  %920 = vst [vmem:[%s1726_s25 + $0x130] sm:$0xff] %v1762_v58  ;;  %v1768_v59 = vpop.f32.mrb[5].mxu0  ;;  %v1770_v60 = vpop.f32.mrb[5].mxu1 }
 0x10b   : > { %886 = vst [vmem:[%s1726_s25 + $0x20] sm:$0xff] %v1768_v59  ;;  %918 = vst [vmem:[%s1726_s25 + $0x120] sm:$0xff] %v1770_v60  ;;  %v1776_v61 = vpop.f32.mrb[6].mxu0  ;;  %v1778_v62 = vpop.f32.mrb[6].mxu1 }
 0x10c   : > { %889 = vst [vmem:[%s1726_s25 + $0x38] sm:$0xff] %v1776_v61  ;;  %921 = vst [vmem:[%s1726_s25 + $0x138] sm:$0xff] %v1778_v62  ;;  %v1784_v63 = vpop.f32.mrb[7].mxu0  ;;  %v1786_v0 = vpop.f32.mrb[7].mxu1 }
 0x10d   : > { %887 = vst [vmem:[%s1726_s25 + $0x28] sm:$0xff] %v1784_v63  ;;  %919 = vst [vmem:[%s1726_s25 + $0x128] sm:$0xff] %v1786_v0 }
 0x111   : > { %v1792_v1 = vpop.f32.mrb[8].mxu0  ;;  %v1794_v2 = vpop.f32.mrb[8].mxu1 }
 0x112   : > { %892 = vst [vmem:[%s1726_s25 + $0x50] sm:$0xff] %v1792_v1  ;;  %924 = vst [vmem:[%s1726_s25 + $0x150] sm:$0xff] %v1794_v2  ;;  %v1800_v3 = vpop.f32.mrb[9].mxu0  ;;  %v1802_v4 = vpop.f32.mrb[9].mxu1 }
 0x113   : > { %890 = vst [vmem:[%s1726_s25 + $0x40] sm:$0xff] %v1800_v3  ;;  %922 = vst [vmem:[%s1726_s25 + $0x140] sm:$0xff] %v1802_v4  ;;  %v1808_v5 = vpop.f32.mrb[10].mxu0  ;;  %v1810_v7 = vpop.f32.mrb[10].mxu1 }
 0x114   : > { %893 = vst [vmem:[%s1726_s25 + $0x58] sm:$0xff] %v1808_v5  ;;  %925 = vst [vmem:[%s1726_s25 + $0x158] sm:$0xff] %v1810_v7  ;;  %v1816_v8 = vpop.f32.mrb[11].mxu0  ;;  %v1818_v10 = vpop.f32.mrb[11].mxu1 }
 0x115   : > { %891 = vst [vmem:[%s1726_s25 + $0x48] sm:$0xff] %v1816_v8  ;;  %923 = vst [vmem:[%s1726_s25 + $0x148] sm:$0xff] %v1818_v10 }
 0x119   : > { %v1824_v11 = vpop.f32.mrb[12].mxu0  ;;  %v1826_v42 = vpop.f32.mrb[12].mxu1 }
 0x11a   : > { %896 = vst [vmem:[%s1726_s25 + $0x70] sm:$0xff] %v1824_v11  ;;  %928 = vst [vmem:[%s1726_s25 + $0x170] sm:$0xff] %v1826_v42  ;;  %v1832_v12 = vpop.f32.mrb[13].mxu0  ;;  %v1834_v13 = vpop.f32.mrb[13].mxu1 }
 0x11b   : > { %894 = vst [vmem:[%s1726_s25 + $0x60] sm:$0xff] %v1832_v12  ;;  %926 = vst [vmem:[%s1726_s25 + $0x160] sm:$0xff] %v1834_v13  ;;  %v1840_v14 = vpop.f32.mrb[14].mxu0  ;;  %v1842_v15 = vpop.f32.mrb[14].mxu1 }
 0x11c   : > { %897 = vst [vmem:[%s1726_s25 + $0x78] sm:$0xff] %v1840_v14  ;;  %929 = vst [vmem:[%s1726_s25 + $0x178] sm:$0xff] %v1842_v15  ;;  %v1848_v16 = vpop.f32.mrb[15].mxu0  ;;  %v1850_v17 = vpop.f32.mrb[15].mxu1 }
 0x11d   : > { %895 = vst [vmem:[%s1726_s25 + $0x68] sm:$0xff] %v1848_v16  ;;  %927 = vst [vmem:[%s1726_s25 + $0x168] sm:$0xff] %v1850_v17 }
 0x121   : > { %v1856_v18 = vpop.f32.mrb[16].mxu0  ;;  %v1858_v19 = vpop.f32.mrb[16].mxu1 }
 0x122   : > { %900 = vst [vmem:[%s1726_s25 + $0x90] sm:$0xff] %v1856_v18  ;;  %932 = vst [vmem:[%s1726_s25 + $0x190] sm:$0xff] %v1858_v19  ;;  %v1864_v20 = vpop.f32.mrb[17].mxu0  ;;  %v1866_v21 = vpop.f32.mrb[17].mxu1 }
 0x123   : > { %898 = vst [vmem:[%s1726_s25 + $0x80] sm:$0xff] %v1864_v20  ;;  %930 = vst [vmem:[%s1726_s25 + $0x180] sm:$0xff] %v1866_v21  ;;  %v1872_v22 = vpop.f32.mrb[18].mxu0  ;;  %v1874_v24 = vpop.f32.mrb[18].mxu1 }
 0x124   : > { %901 = vst [vmem:[%s1726_s25 + $0x98] sm:$0xff] %v1872_v22  ;;  %933 = vst [vmem:[%s1726_s25 + $0x198] sm:$0xff] %v1874_v24  ;;  %v1880_v25 = vpop.f32.mrb[19].mxu0  ;;  %v1882_v26 = vpop.f32.mrb[19].mxu1 }
 0x125   : > { %899 = vst [vmem:[%s1726_s25 + $0x88] sm:$0xff] %v1880_v25  ;;  %931 = vst [vmem:[%s1726_s25 + $0x188] sm:$0xff] %v1882_v26 }
 0x129   : > { %v1888_v27 = vpop.f32.mrb[20].mxu0  ;;  %v1890_v28 = vpop.f32.mrb[20].mxu1 }
 0x12a   : > { %2220 = vst [vmem:[#allocation2_spill] sm:$0xff] %v1890_v28  ;;  %904 = vst [vmem:[%s1726_s25 + $0xb0] sm:$0xff] %v1888_v27  ;;  %v1896_v29 = vpop.f32.mrb[21].mxu0  ;;  %v1898_v31 = vpop.f32.mrb[21].mxu1 }
 0x12b   : > { %936 = vst [vmem:[%s1726_s25 + $0x1b0] sm:$0xff] %v1890_v28  ;;  %2221 = vst [vmem:[#allocation3_spill] sm:$0xff] %v1898_v31  ;;  %v1904_v32 = vpop.f32.mrb[22].mxu0  ;;  %v1906_v30 = vpop.f32.mrb[22].mxu1 }
 0x12c   : > { %902 = vst [vmem:[%s1726_s25 + $0xa0] sm:$0xff] %v1896_v29  ;;  %934 = vst [vmem:[%s1726_s25 + $0x1a0] sm:$0xff] %v1898_v31  ;;  %v1912_v35 = vpop.f32.mrb[23].mxu0  ;;  %v1914_v39 = vpop.f32.mrb[23].mxu1 }
 0x12d   : > { %2222 = vst [vmem:[#allocation4_spill] sm:$0xff] %v1906_v30  ;;  %905 = vst [vmem:[%s1726_s25 + $0xb8] sm:$0xff] %v1904_v32 }
 0x12e   : > { %937 = vst [vmem:[%s1726_s25 + $0x1b8] sm:$0xff] %v1906_v30  ;;  %2223 = vst [vmem:[#allocation5_spill] sm:$0xff] %v1914_v39 }
 0x12f   : > { %903 = vst [vmem:[%s1726_s25 + $0xa8] sm:$0xff] %v1912_v35  ;;  %935 = vst [vmem:[%s1726_s25 + $0x1a8] sm:$0xff] %v1914_v39 }
 0x131   : > { %v1920_v37 = vpop.f32.mrb[24].mxu0  ;;  %v1922_v43 = vpop.f32.mrb[24].mxu1 }
 0x132   : > { %2224 = vst [vmem:[#allocation6_spill] sm:$0xff] %v1922_v43  ;;  %908 = vst [vmem:[%s1726_s25 + $0xd0] sm:$0xff] %v1920_v37  ;;  %v1928_v44 = vpop.f32.mrb[25].mxu0  ;;  %v1930_v45 = vpop.f32.mrb[25].mxu1 }
 0x133   : > { %940 = vst [vmem:[%s1726_s25 + $0x1d0] sm:$0xff] %v1922_v43  ;;  %2225 = vst [vmem:[#allocation7_spill] sm:$0xff] %v1930_v45  ;;  %v1936_v6 = vpop.f32.mrb[26].mxu0  ;;  %v1938_v40 = vpop.f32.mrb[26].mxu1 }
 0x134   : > { %906 = vst [vmem:[%s1726_s25 + $0xc0] sm:$0xff] %v1928_v44  ;;  %938 = vst [vmem:[%s1726_s25 + $0x1c0] sm:$0xff] %v1930_v45  ;;  %v1944_v48 = vpop.f32.mrb[27].mxu0  ;;  %v1946_v49 = vpop.f32.mrb[27].mxu1 }
 0x135   : > { %2226 = vst [vmem:[#allocation8_spill] sm:$0xff] %v1938_v40  ;;  %909 = vst [vmem:[%s1726_s25 + $0xd8] sm:$0xff] %v1936_v6 }
 0x136   : > { %941 = vst [vmem:[%s1726_s25 + $0x1d8] sm:$0xff] %v1938_v40  ;;  %2227 = vst [vmem:[#allocation9_spill] sm:$0xff] %v1946_v49 }
 0x137   : > { %907 = vst [vmem:[%s1726_s25 + $0xc8] sm:$0xff] %v1944_v48  ;;  %939 = vst [vmem:[%s1726_s25 + $0x1c8] sm:$0xff] %v1946_v49 }
 0x139   : > { %v1952_v47 = vpop.f32.mrb[28].mxu0  ;;  %v1954_v50 = vpop.f32.mrb[28].mxu1  ;;  %949 = sbr.rel (%p1239_p4) target bundleno = 321 (0x141), region = 40 }
 0x13a   : > { %2228 = vst [vmem:[#allocation10_spill] sm:$0xff] %v1954_v50  ;;  %912 = vst [vmem:[%s1726_s25 + $0xf0] sm:$0xff] %v1952_v47  ;;  %v1960_v53 = vpop.f32.mrb[29].mxu0  ;;  %v1962_v9 = vpop.f32.mrb[29].mxu1 }
 0x13b   : > { %944 = vst [vmem:[%s1726_s25 + $0x1f0] sm:$0xff] %v1954_v50  ;;  %2229 = vst [vmem:[#allocation11_spill] sm:$0xff] %v1962_v9  ;;  %v1968_v33 = vpop.f32.mrb[30].mxu0  ;;  %v1970_v34 = vpop.f32.mrb[30].mxu1  ;;  %v1403_v50 = vmov (!%p1239_p4), 0.0  }
 0x13c   : > { %910 = vst [vmem:[%s1726_s25 + $0xe0] sm:$0xff] %v1960_v53  ;;  %942 = vst [vmem:[%s1726_s25 + $0x1e0] sm:$0xff] %v1962_v9  ;;  %v1976_v54 = vpop.f32.mrb[31].mxu0  ;;  %v1978_v52 = vpop.f32.mrb[31].mxu1 }
 0x13d   : > { %2230 = vst [vmem:[#allocation12_spill] sm:$0xff] %v1970_v34  ;;  %913 = vst [vmem:[%s1726_s25 + $0xf8] sm:$0xff] %v1968_v33 }
 0x13e   : > { %945 = vst [vmem:[%s1726_s25 + $0x1f8] sm:$0xff] %v1970_v34  ;;  %2231 = vst [vmem:[#allocation13_spill] sm:$0xff] %v1978_v52 }
 0x13f   : > { %911 = vst [vmem:[%s1726_s25 + $0xe8] sm:$0xff] %v1976_v54  ;;  %943 = vst [vmem:[%s1726_s25 + $0x1e8] sm:$0xff] %v1978_v52 }
 0x140   : > { %950 = vst [vmem:[%s2195_s5] sm:$0x3] %v1403_v50 }
 0x141 PF: > { %v951_v34 = vadd.f32 %v1752_v41, %v1736_v46  ;;  %v1020_v50 = vmul.f32 %v1736_v46, %v1736_v46  ;;  %v1021_v28 = vmul.f32 %v1752_v41, %v1752_v41  ;;  %v1025_v41 = vmul.f32 %v1784_v63, %v1784_v63 }
 0x142   : > { %vm1154_vm0 = vcmask 1040384  }
 0x143   : > { %v952_v9 = vadd.f32 %v1728_v23, %v951_v34 }
 0x145   : > { %v953_v40 = vadd.f32 %v1744_v36, %v952_v9  ;;  %v1022_v9 = vmul.f32 %v1728_v23, %v1728_v23 }
 0x147   : > { %v954_v43 = vadd.f32 %v953_v40, %v1768_v59 }
 0x149   : > { %v955_v52 = vadd.f32 %v954_v43, %v1784_v63  ;;  %v1023_v43 = vmul.f32 %v1744_v36, %v1744_v36 }
 0x14b   : > { %v956_v49 = vadd.f32 %v1760_v57, %v955_v52  ;;  %v1084_v52 = vadd.f32 %v1021_v28, %v1020_v50  ;;  %v1027_v28 = vmul.f32 %v1776_v61, %v1776_v61 }
 0x14d   : > { %v957_v45 = vadd.f32 %v1776_v61, %v956_v49  ;;  %v1085_v46 = vadd.f32 %v1084_v52, %v1022_v9  ;;  %v1028_v9 = vmul.f32 %v1800_v3, %v1800_v3  ;;  %v1030_v52 = vmul.f32 %v1792_v1, %v1792_v1 }
 0x14f   : > { %v958_v30 = vadd.f32 %v957_v45, %v1800_v3  ;;  %v1024_v45 = vmul.f32 %v1768_v59, %v1768_v59 }
 0x151   : > { %v959_v34 = vadd.f32 %v958_v30, %v1816_v8  ;;  %v1086_v30 = vadd.f32 %v1085_v46, %v1023_v43  ;;  %v1032_v46 = vmul.f32 %v1832_v12, %v1832_v12 }
 0x153   : > { %v960_v40 = vadd.f32 %v1792_v1, %v959_v34  ;;  %v1026_v34 = vmul.f32 %v1760_v57, %v1760_v57  ;;  %v1087_v31 = vadd.f32 %v1086_v30, %v1024_v45  ;;  %v1033_v30 = vmul.f32 %v1848_v16, %v1848_v16 }
 0x155   : > { %v961_v49 = vadd.f32 %v1808_v5, %v960_v40  ;;  %v1088_v50 = vadd.f32 %v1087_v31, %v1025_v41  ;;  %v1031_v31 = vmul.f32 %v1808_v5, %v1808_v5 }
 0x157   : > { %v962_v39 = vadd.f32 %v961_v49, %v1832_v12  ;;  %v1089_v40 = vadd.f32 %v1088_v50, %v1026_v34  ;;  %v1034_v34 = vmul.f32 %v1824_v11, %v1824_v11 }
 0x159   : > { %v963_v23 = vadd.f32 %v962_v39, %v1848_v16  ;;  %v1029_v39 = vmul.f32 %v1816_v8, %v1816_v8  ;;  %v1090_v43 = vadd.f32 %v1089_v40, %v1027_v28  ;;  %v1035_v28 = vmul.f32 %v1840_v14, %v1840_v14 }
 0x15a   : > { %v1037_v40 = vmul.f32 %v1880_v25, %v1880_v25 }
 0x15b   : > { %v964_v36 = vadd.f32 %v1824_v11, %v963_v23  ;;  %v1091_v49 = vadd.f32 %v1090_v43, %v1028_v9 }
 0x15d   : > { %v965_v59 = vadd.f32 %v1840_v14, %v964_v36  ;;  %v1092_v45 = vadd.f32 %v1091_v49, %v1029_v39  ;;  %v1038_v39 = vmul.f32 %v1856_v18, %v1856_v18  ;;  %v1040_v49 = vmul.f32 %v1896_v29, %v1896_v29 }
 0x15f   : > { %v966_v63 = vadd.f32 %v965_v59, %v1864_v20  ;;  %v1093_v41 = vadd.f32 %v1092_v45, %v1030_v52  ;;  %v1036_v59 = vmul.f32 %v1864_v20, %v1864_v20 }
 0x161   : > { %v967_v57 = vadd.f32 %v966_v63, %v1880_v25  ;;  %v1094_v23 = vadd.f32 %v1093_v41, %v1031_v31  ;;  %v1041_v31 = vmul.f32 %v1912_v35, %v1912_v35  ;;  %v1043_v41 = vmul.f32 %v1904_v32, %v1904_v32 }
 0x163   : > { %v968_v61 = vadd.f32 %v1856_v18, %v967_v57  ;;  %v1095_v36 = vadd.f32 %v1094_v23, %v1032_v46  ;;  %v1039_v57 = vmul.f32 %v1872_v22, %v1872_v22 }
 0x165   : > { %v969_v3 = vadd.f32 %v1872_v22, %v968_v61  ;;  %v1096_v50 = vadd.f32 %v1095_v36, %v1033_v30  ;;  %v1044_v30 = vmul.f32 %v1928_v44, %v1928_v44  ;;  %v1046_v36 = vmul.f32 %v1920_v37, %v1920_v37 }
 0x167   : > { %v970_v8 = vadd.f32 %v969_v3, %v1896_v29  ;;  %v1097_v9 = vadd.f32 %v1096_v50, %v1034_v34  ;;  %v1042_v3 = vmul.f32 %v1888_v27, %v1888_v27 }
 0x169   : > { %v971_v1 = vadd.f32 %v970_v8, %v1912_v35  ;;  %v1098_v63 = vadd.f32 %v1097_v9, %v1035_v28  ;;  %v1047_v28 = vmul.f32 %v1936_v6, %v1936_v6  ;;  %v1049_v9 = vmul.f32 %v1976_v54, %v1976_v54 }
 0x16b   : > { %v972_v5 = vadd.f32 %v1888_v27, %v971_v1  ;;  %v1099_v43 = vadd.f32 %v1098_v63, %v1036_v59  ;;  %v1045_v1 = vmul.f32 %v1944_v48, %v1944_v48 }
 0x16d   : > { %v973_v12 = vadd.f32 %v1904_v32, %v972_v5  ;;  %v1100_v52 = vadd.f32 %v1099_v43, %v1037_v40  ;;  %v1050_v40 = vmul.f32 %v1952_v47, %v1952_v47  ;;  %v1052_v43 = vmul.f32 %v1738_v51, %v1738_v51 }
 0x16f   : > { %v974_v16 = vadd.f32 %v973_v12, %v1928_v44  ;;  %v1101_v61 = vadd.f32 %v1100_v52, %v1038_v39  ;;  %v1048_v12 = vmul.f32 %v1960_v53, %v1960_v53 }
 0x171   : > { %v975_v11 = vadd.f32 %v974_v16, %v1944_v48  ;;  %v1102_v45 = vadd.f32 %v1101_v61, %v1039_v57  ;;  %v1053_v57 = vmul.f32 %v1754_v56, %v1754_v56  ;;  %v1055_v61 = vmul.f32 %v1746_v55, %v1746_v55 }
 0x173   : > { %v976_v14 = vadd.f32 %v1920_v37, %v975_v11  ;;  %v1103_v46 = vadd.f32 %v1102_v45, %v1040_v49  ;;  %v1051_v11 = vmul.f32 %v1968_v33, %v1968_v33 }
 0x175   : > { %v977_v20 = vadd.f32 %v1936_v6, %v976_v14  ;;  %v1104_v8 = vadd.f32 %v1103_v46, %v1041_v31  ;;  %v1056_v31 = vmul.f32 %v1770_v60, %v1770_v60  ;;  %v1058_v46 = vmul.f32 %v1762_v58, %v1762_v58 }
 0x177   : > { %v978_v25 = vadd.f32 %v977_v20, %v1960_v53  ;;  %v1105_v23 = vadd.f32 %v1104_v8, %v1042_v3  ;;  %v1054_v20 = vmul.f32 %v1730_v38, %v1730_v38 }
 0x179   : > { %v979_v18 = vadd.f32 %v978_v25, %v1976_v54  ;;  %v1106_v34 = vadd.f32 %v1105_v23, %v1043_v41  ;;  %v1059_v41 = vmul.f32 %v1778_v62, %v1778_v62  ;;  %v1061_v23 = vmul.f32 %v1818_v10, %v1818_v10 }
 0x17b   : > { %v980_v22 = vadd.f32 %v1952_v47, %v979_v18  ;;  %v1107_v5 = vadd.f32 %v1106_v34, %v1044_v30  ;;  %v1057_v18 = vmul.f32 %v1786_v0, %v1786_v0 }
 0x17d   : > { %v981_v29 = vadd.f32 %v1968_v33, %v980_v22  ;;  %v1108_v50 = vadd.f32 %v1107_v5, %v1045_v1  ;;  %v1062_v1 = vmul.f32 %v1794_v2, %v1794_v2  ;;  %v1064_v5 = vmul.f32 %v1834_v13, %v1834_v13 }
 0x17f   : > { %v982_v35 = vadd.f32 %v981_v29, %v1738_v51  ;;  %v1109_v59 = vadd.f32 %v1108_v50, %v1046_v36  ;;  %v1060_v29 = vmul.f32 %v1802_v4, %v1802_v4  ;;  %v1065_v50 = vmul.f32 %v1850_v17, %v1850_v17 }
 0x181   : > { %v983_v27 = vadd.f32 %v982_v35, %v1754_v56  ;;  %v1110_v16 = vadd.f32 %v1109_v59, %v1047_v28  ;;  %v1066_v59 = vmul.f32 %v1826_v42, %v1826_v42 }
 0x183   : > { %v984_v32 = vadd.f32 %v1730_v38, %v983_v27  ;;  %v1111_v63 = vadd.f32 %v1110_v16, %v1048_v12  ;;  %v1063_v27 = vmul.f32 %v1810_v7, %v1810_v7  ;;  %v1067_v16 = vmul.f32 %v1842_v15, %v1842_v15 }
 0x185   : > { %v985_v44 = vadd.f32 %v1746_v55, %v984_v32  ;;  %v1112_v39 = vadd.f32 %v1111_v63, %v1049_v9  ;;  %v1068_v63 = vmul.f32 %v1866_v21, %v1866_v21 }
 0x187   : > { %v986_v48 = vadd.f32 %v985_v44, %v1770_v60  ;;  %v1113_v14 = vadd.f32 %v1112_v39, %v1050_v40  ;;  %v1069_v39 = vmul.f32 %v1882_v26, %v1882_v26 }
 0x189   : > { %v987_v37 = vadd.f32 %v986_v48, %v1786_v0  ;;  %v1114_v52 = vadd.f32 %v1113_v14, %v1051_v11  ;;  %v1070_v14 = vmul.f32 %v1858_v19, %v1858_v19 }
 0x18b   : > { %v988_v6 = vadd.f32 %v1762_v58, %v987_v37  ;;  %v1115_v49 = vadd.f32 %v1114_v52, %v1052_v43  ;;  %v1071_v52 = vmul.f32 %v1874_v24, %v1874_v24 }
 0x18d   : > { %v989_v53 = vadd.f32 %v1778_v62, %v988_v6  ;;  %v1116_v25 = vadd.f32 %v1115_v49, %v1053_v57 }
 0x18f   : > { %v990_v54 = vadd.f32 %v989_v53, %v1802_v4  ;;  %v1117_v45 = vadd.f32 %v1116_v25, %v1054_v20 }
 0x191   : > { %v991_v47 = vadd.f32 %v990_v54, %v1818_v10  ;;  %v1118_v3 = vadd.f32 %v1117_v45, %v1055_v61  ;;  %v2232_v10 = vld [vmem:[#allocation3_spill] sm:$0xff] }
 0x192   : > { %v1072_v49 = vmul.f32 %v2232_v10, %v2232_v10 }
 0x193   : > { %v992_v33 = vadd.f32 %v1794_v2, %v991_v47  ;;  %v1119_v22 = vadd.f32 %v1118_v3, %v1056_v31  ;;  %v2233_v2 = vld [vmem:[#allocation5_spill] sm:$0xff]  ;;  %v2242_v3 = vld [vmem:[#allocation10_spill] sm:$0xff] }
 0x194   : > { %v1073_v25 = vmul.f32 %v2233_v2, %v2233_v2 }
 0x195   : > { %v993_v51 = vadd.f32 %v1810_v7, %v992_v33  ;;  %v1120_v8 = vadd.f32 %v1119_v22, %v1057_v18  ;;  %v2234_v7 = vld [vmem:[#allocation2_spill] sm:$0xff] }
 0x196   : > { %v1074_v45 = vmul.f32 %v2234_v7, %v2234_v7 }
 0x197   : > { %v994_v56 = vadd.f32 %v993_v51, %v1834_v13  ;;  %v1121_v30 = vadd.f32 %v1120_v8, %v1058_v46  ;;  %v2235_v13 = vld [vmem:[#allocation4_spill] sm:$0xff] }
 0x198   : > { %v2243_v8 = vld [vmem:[#allocation12_spill] sm:$0xff] }
 0x199   : > { %v995_v38 = vadd.f32 %v994_v56, %v1850_v17  ;;  %v1122_v35 = vadd.f32 %v1121_v30, %v1059_v41  ;;  %v2236_v17 = vld [vmem:[#allocation7_spill] sm:$0xff] }
 0x19a   : > { %v1076_v46 = vmul.f32 %v2236_v17, %v2236_v17 }
 0x19b   : > { %v996_v55 = vadd.f32 %v1826_v42, %v995_v38  ;;  %v1123_v34 = vadd.f32 %v1122_v35, %v1060_v29  ;;  %v2237_v42 = vld [vmem:[#allocation9_spill] sm:$0xff] }
 0x19d   : > { %v997_v60 = vadd.f32 %v1842_v15, %v996_v55  ;;  %v1124_v36 = vadd.f32 %v1123_v34, %v1061_v23  ;;  %v2238_v15 = vld [vmem:[#allocation6_spill] sm:$0xff]  ;;  %v1077_v55 = vmul.f32 %v2237_v42, %v2237_v42 }
 0x19e   : > { %v1078_v29 = vmul.f32 %v2238_v15, %v2238_v15 }
 0x19f   : > { %v998_v0 = vadd.f32 %v997_v60, %v1866_v21  ;;  %v1125_v32 = vadd.f32 %v1124_v36, %v1062_v1  ;;  %v2239_v21 = vld [vmem:[#allocation8_spill] sm:$0xff]  ;;  %v1082_v36 = vmul.f32 %v2242_v3, %v2242_v3 }
 0x1a1   : > { %v999_v58 = vadd.f32 %v998_v0, %v1882_v26  ;;  %v1126_v44 = vadd.f32 %v1125_v32, %v1063_v27  ;;  %v2240_v26 = vld [vmem:[#allocation11_spill] sm:$0xff]  ;;  %v1079_v0 = vmul.f32 %v2239_v21, %v2239_v21 }
 0x1a3   : > { %v1000_v62 = vadd.f32 %v1858_v19, %v999_v58  ;;  %v1127_v48 = vadd.f32 %v1126_v44, %v1064_v5  ;;  %v2241_v19 = vld [vmem:[#allocation13_spill] sm:$0xff]  ;;  %v1080_v58 = vmul.f32 %v2240_v26, %v2240_v26  ;;  %v1083_v5 = vmul.f32 %v2243_v8, %v2243_v8 }
 0x1a4   : > { %v1081_v34 = vmul.f32 %v2241_v19, %v2241_v19 }
 0x1a5   : > { %v1001_v4 = vadd.f32 %v1874_v24, %v1000_v62  ;;  %v1128_v37 = vadd.f32 %v1127_v48, %v1065_v50  ;;  %v1075_v24 = vmul.f32 %v2235_v13, %v2235_v13 }
 0x1a7   : > { %v1002_v28 = vadd.f32 %v1001_v4, %v2232_v10  ;;  %v1129_v6 = vadd.f32 %v1128_v37, %v1066_v59 }
 0x1a9   : > { %v1003_v12 = vadd.f32 %v1002_v28, %v2233_v2  ;;  %v1130_v53 = vadd.f32 %v1129_v6, %v1067_v16 }
 0x1ab   : > { %v1004_v9 = vadd.f32 %v2234_v7, %v1003_v12  ;;  %v1131_v54 = vadd.f32 %v1130_v53, %v1068_v63 }
 0x1ad   : > { %v1005_v40 = vadd.f32 %v2235_v13, %v1004_v9  ;;  %v1132_v47 = vadd.f32 %v1131_v54, %v1069_v39  ;;  %v1153_v13 = vld [vmem:[%s2195_s5] sm:$0x3] }
 0x1af   : > { %v1006_v11 = vadd.f32 %v1005_v40, %v2236_v17  ;;  %v1133_v33 = vadd.f32 %v1132_v47, %v1070_v14 }
 0x1b1   : > { %v1007_v43 = vadd.f32 %v1006_v11, %v2237_v42  ;;  %v1134_v51 = vadd.f32 %v1133_v33, %v1071_v52 }
 0x1b3   : > { %v1008_v57 = vadd.f32 %v2238_v15, %v1007_v43  ;;  %v1135_v56 = vadd.f32 %v1134_v51, %v1072_v49 }
 0x1b5   : > { %v1009_v20 = vadd.f32 %v2239_v21, %v1008_v57  ;;  %v1136_v18 = vadd.f32 %v1135_v56, %v1073_v25 }
 0x1b7   : > { %v1010_v61 = vadd.f32 %v1009_v20, %v2240_v26  ;;  %v1137_v22 = vadd.f32 %v1136_v18, %v1074_v45 }
 0x1b9   : > { %v1011_v31 = vadd.f32 %v1010_v61, %v2241_v19  ;;  %v1138_v41 = vadd.f32 %v1137_v22, %v1075_v24 }
 0x1bb   : > { %v1012_v38 = vadd.f32 %v2242_v3, %v1011_v31  ;;  %v1139_v30 = vadd.f32 %v1138_v41, %v1076_v46 }
 0x1bd   : > { %v1013_v60 = vadd.f32 %v2243_v8, %v1012_v38  ;;  %v1140_v23 = vadd.f32 %v1139_v30, %v1077_v55 }
 0x1bf   : > { %v1014_v35 = vrot.slane %v1013_v60, 4  ;;  %v1141_v1 = vadd.f32 %v1140_v23, %v1078_v29 }
 0x1c1   : > { %v1142_v62 = vadd.f32 %v1141_v1, %v1079_v0  ;;  %v1015_v27 = vadd.f32 %v1014_v35, %v1013_v60 }
 0x1c3   : > { %v1143_v4 = vadd.f32 %v1142_v62, %v1080_v58  ;;  %v1016_v10 = vrot.slane %v1015_v27, 2 }
 0x1c5   : > { %v1144_v32 = vadd.f32 %v1143_v4, %v1081_v34  ;;  %v1017_v44 = vadd.f32 %v1016_v10, %v1015_v27 }
 0x1c7   : > { %v1145_v28 = vadd.f32 %v1144_v32, %v1082_v36  ;;  %v1018_v59 = vrot.slane %v1017_v44, 1 }
 0x1c9   : > { %v1146_v50 = vadd.f32 %v1145_v28, %v1083_v5  ;;  %v1019_v9 = vadd.f32 %v1018_v59, %v1017_v44 }
 0x1cb   : > { %v1147_v2 = vrot.slane %v1146_v50, 4 }
 0x1cd   : > { %v1148_v12 = vadd.f32 %v1147_v2, %v1146_v50 }
 0x1cf   : > { %v1149_v48 = vrot.slane %v1148_v12, 2 }
 0x1d1   : > { %v1150_v7 = vadd.f32 %v1149_v48, %v1148_v12 }
 0x1d3   : > { %v1151_v16 = vrot.slane %v1150_v7, 1 }
 0x1d5   : > { %v1152_v37 = vadd.f32 %v1151_v16, %v1150_v7 }
 0x1d7   : > { %v1155_v40 = vsel %vm1154_vm0, %v1019_v9, %v1152_v37 }
 0x1d8   : > { %v1156_v63 = vadd.f32 %v1155_v40, %v1153_v13 }
 0x1da   : > { %1157 = vst [vmem:[%s2195_s5] sm:$0x3] %v1156_v63 }
 0x1db PF: > { %s16_s18 = sadd.s32 1, %s1401_s18  }
 0x1dc   : > { %p13_p5 = scmp.ge.s32.totalorder %s16_s18, 4  }
 0x1de   :  { %15 = sbr.rel (!%p13_p5) target bundleno = 1 (0x1), region = 78 }

</bundles_post_ra>
